<compile_context>
chip_gen: v5e
topology: v5e:2x2
jax: 0.10.0
libtpu: 0.0.40
codegen_flags: <defaults>
</compile_context>

<pallas_src>
import functools

import jax
import jax.numpy as jnp
from jax.experimental import pallas as pl
from jax.experimental.pallas import tpu as pltpu

# ---------------- synthetic "bert-mini" config ----------------
VOCAB = 128
MAX_POS = 64
TYPE_VOCAB = 2
HIDDEN = 32
NUM_HEADS = 2
HEAD_DIM = HIDDEN // NUM_HEADS
INTERMEDIATE = 64
NUM_LAYERS = 2
NUM_LABELS = 2
LN_EPS = 1e-12
INIT_RANGE = 0.02


def _vmem():
    return pl.BlockSpec(memory_space=pltpu.MemorySpace.VMEM)


def _layernorm(x, gamma, beta):
    # statistics kept in f32 (LN_EPS=1e-12 would be meaningless in bf16)
    mu = jnp.mean(x, axis=-1, keepdims=True)
    var = jnp.mean((x - mu) ** 2, axis=-1, keepdims=True)
    return (x - mu) * jax.lax.rsqrt(var + LN_EPS) * gamma + beta


# ---------------- the single fused kernel ----------------
# Packed-parameter layouts:
#   lbias (L, 8, 3H) f32 rows: 0 bqkv(3H) | 1 bo(H) | 2 ln1_g | 3 ln1_b
#                              4 b1(I)    | 5 b2(H) | 6 ln2_g | 7 ln2_b
#   misc  (4, H)     f32 rows: 0 emb_ln_g | 1 emb_ln_b | 2 pooler_b | 3 cls_b (padded)
#   head_w (H, H+NUM_LABELS) bf16 lanes: [pooler_W | classifier_W]
def fused_forward_kernel(B, S,
                         labels_ref,                       # VMEM (B, 1) int32
                         emb_ref,                          # VMEM (B*S, H) f32
                         misc_ref,                         # VMEM (4, H) f32
                         lbias_ref,                        # VMEM (L, 8, 3H) f32
                         wqkv_ref,                         # VMEM (L, H, 3H) bf16 (scale folded into Q cols)
                         wo_ref,                           # VMEM (L, H, H) bf16
                         w1_ref,                           # VMEM (L, H, I) bf16
                         w2_ref,                           # VMEM (L, I, H) bf16
                         headw_ref,                        # VMEM (H, H+NL) bf16
                         logits_ref, loss_ref):
    misc = misc_ref[...]
    eg, eb = misc[0:1, :], misc[1:2, :]
    bp, bc = misc[2:3, :], misc[3:4, :NUM_LABELS]

    # ---- embedding LayerNorm ----
    x = _layernorm(emb_ref[...].astype(jnp.float32), eg, eb)          # (B*S, H) f32

    # ---- encoder layers (static unroll; stacked weights indexed by layer) ----
    # TODO(synk): no attention_mask support — padded tokens (if ever used) would attend.
    # TODO(synk): when B/S/HIDDEN/NUM_LAYERS scale up, move the layer loop onto an
    # "arbitrary" grid axis with per-layer weight BlockSpecs (index_map -> (l,0,0)) and
    # add a "parallel" row-tile axis over B*S, re-deriving tiles vs v7x's 64 MiB VMEM.
    for l in range(NUM_LAYERS):
        lb = lbias_ref[l]                                             # (8, 3H) f32
        bqkv = lb[0:1, :]
        bo = lb[1:2, :HIDDEN]
        ln1g, ln1b = lb[2:3, :HIDDEN], lb[3:4, :HIDDEN]
        b1 = lb[4:5, :INTERMEDIATE]
        b2 = lb[5:6, :HIDDEN]
        ln2g, ln2b = lb[6:7, :HIDDEN], lb[7:8, :HIDDEN]

        # fused QKV projection: one 2-D MXU matmul (B*S, H) @ (H, 3H)
        qkv = jnp.dot(x.astype(jnp.bfloat16), wqkv_ref[l],
                      preferred_element_type=jnp.float32) + bqkv      # (B*S, 3H) f32
        qkv_bf = qkv.astype(jnp.bfloat16)                             # single bf16 pack per layer

        # multi-head self-attention: per-head contractions batched over the batch dim
        ctx_heads = []
        for h in range(NUM_HEADS):
            qo = h * HEAD_DIM
            ko = HIDDEN + h * HEAD_DIM
            vo = 2 * HIDDEN + h * HEAD_DIM
            qh = qkv_bf[:, qo:qo + HEAD_DIM].reshape(B, S, HEAD_DIM)
            kh = qkv_bf[:, ko:ko + HEAD_DIM].reshape(B, S, HEAD_DIM)
            vh = qkv_bf[:, vo:vo + HEAD_DIM].reshape(B, S, HEAD_DIM)
            # scores: scale already folded into Wq
            s = jnp.einsum('bqd,bkd->bqk', qh, kh,
                           preferred_element_type=jnp.float32)        # (B, S, S) f32
            s = s - jnp.max(s, axis=-1, keepdims=True)
            p = jnp.exp(s)
            p = p / jnp.sum(p, axis=-1, keepdims=True)                # exact softmax
            ctx = jnp.einsum('bqk,bkd->bqd', p.astype(jnp.bfloat16), vh,
                             preferred_element_type=jnp.float32)      # (B, S, D) f32
            ctx_heads.append(ctx.reshape(B * S, HEAD_DIM))
        ctx_full = (ctx_heads[0] if NUM_HEADS == 1
                    else jnp.concatenate(ctx_heads, axis=1))          # (B*S, H) f32

        # single output projection over the full hidden dim
        attn_out = jnp.dot(ctx_full.astype(jnp.bfloat16), wo_ref[l],
                           preferred_element_type=jnp.float32) + bo   # (B*S, H) f32

        h1 = _layernorm(x + attn_out, ln1g, ln1b)

        # ---- FFN ----
        ffn = jnp.dot(h1.astype(jnp.bfloat16), w1_ref[l],
                      preferred_element_type=jnp.float32) + b1
        # TODO(synk): HF BERT default 'gelu' is the exact erf form; tanh approximation used here.
        ffn = jax.nn.gelu(ffn, approximate=True)
        ffn = jnp.dot(ffn.astype(jnp.bfloat16), w2_ref[l],
                      preferred_element_type=jnp.float32) + b2
        x = _layernorm(h1 + ffn, ln2g, ln2b)

    # ---- pooler + classifier ([CLS] rows via one reshape + slice) ----
    headw = headw_ref[...]                                            # (H, H+NL) bf16
    cls = x.reshape(B, S, HIDDEN)[:, 0:1, :].reshape(B, HIDDEN)       # (B, H) f32
    pooled = jnp.tanh(jnp.dot(cls.astype(jnp.bfloat16), headw[:, :HIDDEN],
                              preferred_element_type=jnp.float32) + bp)
    logits = jnp.dot(pooled.astype(jnp.bfloat16),
                     headw[:, HIDDEN:HIDDEN + NUM_LABELS],
                     preferred_element_type=jnp.float32) + bc         # (B, NL) f32
    logits_ref[...] = logits.astype(logits_ref.dtype)

    # ---- cross-entropy, reduction='none' (labels already a (B,1) vector in VMEM) ----
    lab_col = labels_ref[...]                                         # (B, 1) int32
    m = jnp.max(logits, axis=-1, keepdims=True)
    lse = jnp.log(jnp.sum(jnp.exp(logits - m), axis=-1, keepdims=True)) + m
    idx = jax.lax.broadcasted_iota(jnp.int32, (B, NUM_LABELS), 1)
    picked = jnp.sum(jnp.where(idx == lab_col, logits, 0.0), axis=-1, keepdims=True)
    loss_ref[...] = (lse - picked).astype(loss_ref.dtype)


# ---------------- parameter construction (deterministic, synthetic) ----------------
def init_params(key):
    def normal(k, shape):
        return jax.random.normal(k, shape, jnp.float32) * INIT_RANGE

    keys = iter(jax.random.split(key, 64))
    scale = 1.0 / float(HEAD_DIM) ** 0.5

    wqkv, wo, w1, w2 = [], [], [], []
    for _ in range(NUM_LAYERS):
        # attention 1/sqrt(head_dim) folded into the Q weight columns (exact in bf16: 0.25)
        wq = normal(next(keys), (HIDDEN, HIDDEN)) * scale
        wk = normal(next(keys), (HIDDEN, HIDDEN))
        wv = normal(next(keys), (HIDDEN, HIDDEN))
        wqkv.append(jnp.concatenate([wq, wk, wv], axis=1))            # fused (H, 3H)
        wo.append(normal(next(keys), (HIDDEN, HIDDEN)))
        w1.append(normal(next(keys), (HIDDEN, INTERMEDIATE)))
        w2.append(normal(next(keys), (INTERMEDIATE, HIDDEN)))

    def stack_bf16(ws):
        return jnp.stack(ws, axis=0).astype(jnp.bfloat16)             # MXU inputs in bf16
    # TODO(synk): bf16 weights / f32 accumulation; an fp32 PyTorch reference differs ~1e-2.

    # packed per-layer small f32 params (L, 8, 3H):
    #   row0 bqkv(3H) | row1 bo(H) | row2 ln1_g | row3 ln1_b | row4 b1(I) | row5 b2 | row6 ln2_g | row7 ln2_b
    # biases are zero-initialized (as in nn.Linear here); LN gammas are ones.
    # NOTE: if bqkv's Q third were nonzero it would also need the `scale` fold.
    lbias = jnp.zeros((NUM_LAYERS, 8, 3 * HIDDEN), jnp.float32)
    lbias = lbias.at[:, 2, :HIDDEN].set(1.0)                          # ln1_g
    lbias = lbias.at[:, 6, :HIDDEN].set(1.0)                          # ln2_g

    # packed misc f32 params (4, H): emb_ln_g | emb_ln_b | pooler_b | cls_b (padded to H)
    misc = jnp.zeros((4, HIDDEN), jnp.float32)
    misc = misc.at[0, :].set(1.0)                                     # emb_ln_g

    # pooler + classifier weights packed along lanes; classifier is the
    # "initialized_module": normal(0, initializer_range), zero bias.
    head_w = jnp.concatenate([normal(next(keys), (HIDDEN, HIDDEN)),
                              normal(next(keys), (HIDDEN, NUM_LABELS))],
                             axis=1).astype(jnp.bfloat16)             # (H, H+NL)

    return {
        'word_emb': normal(next(keys), (VOCAB, HIDDEN)),
        'pos_emb': normal(next(keys), (MAX_POS, HIDDEN)),
        'type_emb': normal(next(keys), (TYPE_VOCAB, HIDDEN)),
        'misc': misc,
        'lbias': lbias,
        'wqkv': stack_bf16(wqkv),
        'wo': stack_bf16(wo),
        'w1': stack_bf16(w1),
        'w2': stack_bf16(w2),
        'head_w': head_w,
    }


# ---------------- LearnerModel.forward equivalent ----------------
@jax.jit
def learner_model_forward(params, input_ids, token_type_ids, labels):
    B, S = input_ids.shape
    # embedding gathers stay in XLA (glue); everything else runs in one Pallas kernel
    emb = (jnp.take(params['word_emb'], input_ids, axis=0)
           + params['pos_emb'][None, :S, :]
           + jnp.take(params['type_emb'], token_type_ids, axis=0))
    emb2d = emb.reshape(B * S, HIDDEN)

    kernel = functools.partial(fused_forward_kernel, B, S)
    logits, loss = pl.pallas_call(
        kernel,
        out_shape=(jax.ShapeDtypeStruct((B, NUM_LABELS), jnp.float32),
                   jax.ShapeDtypeStruct((B, 1), jnp.float32)),
        in_specs=[_vmem()] * 9,
        out_specs=(_vmem(), _vmem()),
    )(labels.reshape(B, 1).astype(jnp.int32),
      emb2d,
      params['misc'], params['lbias'],
      params['wqkv'], params['wo'], params['w1'], params['w2'],
      params['head_w'])

    # TODO(synk): hidden_states / attentions tuples of SequenceClassifierOutput not returned.
    return loss.reshape(B), logits


if __name__ == "__main__":
    key = jax.random.PRNGKey(0)
    pkey, ikey, lkey = jax.random.split(key, 3)

    params = init_params(pkey)

    B, S = 2, 8
    input_ids = jax.random.randint(ikey, (B, S), 0, VOCAB, dtype=jnp.int32)
    token_type_ids = jnp.zeros((B, S), jnp.int32)
    labels = jax.random.randint(lkey, (B,), 0, NUM_LABELS, dtype=jnp.int32)

    loss, logits = learner_model_forward(params, input_ids, token_type_ids, labels)
    jax.block_until_ready((loss, logits))

    assert logits.shape == (B, NUM_LABELS)
    assert loss.shape == (B,)
    assert bool(jnp.all(jnp.isfinite(logits))) and bool(jnp.all(jnp.isfinite(loss)))
    print("KERNEL_OK")
</pallas_src>

<mosaic_0001>
module attributes {stable_mosaic.version = 11 : i64} {
  func.func @fused_forward_kernel(%arg0: memref<2x1xi32, #tpu.memory_space<vmem>>, %arg1: memref<16x32xf32, #tpu.memory_space<vmem>>, %arg2: memref<4x32xf32, #tpu.memory_space<vmem>>, %arg3: memref<2x8x96xf32, #tpu.memory_space<vmem>>, %arg4: memref<2x32x96xbf16, #tpu.memory_space<vmem>>, %arg5: memref<2x32x32xbf16, #tpu.memory_space<vmem>>, %arg6: memref<2x32x64xbf16, #tpu.memory_space<vmem>>, %arg7: memref<2x64x32xbf16, #tpu.memory_space<vmem>>, %arg8: memref<32x34xbf16, #tpu.memory_space<vmem>>, %arg9: memref<2x2xf32, #tpu.memory_space<vmem>>, %arg10: memref<2x1xf32, #tpu.memory_space<vmem>>) attributes {dimension_semantics = [], scalar_prefetch = 0 : i64, scratch_operands = 0 : i64, tpu.core_type = #tpu.core_type<tc>} {
    %c0 = arith.constant 0 : index
    %c0_0 = arith.constant 0 : index
    %0 = vector.load %arg2[%c0, %c0_0] : memref<4x32xf32, #tpu.memory_space<vmem>>, vector<4x32xf32>
    %1 = vector.extract_strided_slice %0 {offsets = [0, 0], sizes = [1, 32], strides = [1, 1]} : vector<4x32xf32> to vector<1x32xf32>
    %2 = vector.extract_strided_slice %0 {offsets = [1, 0], sizes = [1, 32], strides = [1, 1]} : vector<4x32xf32> to vector<1x32xf32>
    %3 = vector.extract_strided_slice %0 {offsets = [2, 0], sizes = [1, 32], strides = [1, 1]} : vector<4x32xf32> to vector<1x32xf32>
    %4 = vector.extract_strided_slice %0 {offsets = [3, 0], sizes = [1, 2], strides = [1, 1]} : vector<4x32xf32> to vector<1x2xf32>
    %c0_1 = arith.constant 0 : index
    %c0_2 = arith.constant 0 : index
    %5 = vector.load %arg1[%c0_1, %c0_2] : memref<16x32xf32, #tpu.memory_space<vmem>>, vector<16x32xf32>
    %cst = arith.constant dense<0.000000e+00> : vector<16xf32>
    %6 = vector.multi_reduction <add>, %5, %cst [1] : vector<16x32xf32> to vector<16xf32>
    %7 = vector.shape_cast %6 : vector<16xf32> to vector<16x1xf32>
    %cst_3 = arith.constant 3.200000e+01 : f32
    %8 = vector.broadcast %cst_3 : f32 to vector<16x1xf32>
    %9 = arith.divf %7, %8 : vector<16x1xf32>
    %10 = vector.broadcast %9 : vector<16x1xf32> to vector<16x32xf32>
    %11 = arith.subf %5, %10 : vector<16x32xf32>
    %12 = arith.mulf %11, %11 : vector<16x32xf32>
    %cst_4 = arith.constant dense<0.000000e+00> : vector<16xf32>
    %13 = vector.multi_reduction <add>, %12, %cst_4 [1] : vector<16x32xf32> to vector<16xf32>
    %14 = vector.shape_cast %13 : vector<16xf32> to vector<16x1xf32>
    %cst_5 = arith.constant 3.200000e+01 : f32
    %15 = vector.broadcast %cst_5 : f32 to vector<16x1xf32>
    %16 = arith.divf %14, %15 : vector<16x1xf32>
    %17 = vector.broadcast %9 : vector<16x1xf32> to vector<16x32xf32>
    %18 = arith.subf %5, %17 : vector<16x32xf32>
    %cst_6 = arith.constant 9.99999996E-13 : f32
    %19 = vector.broadcast %cst_6 : f32 to vector<16x1xf32>
    %20 = arith.addf %16, %19 : vector<16x1xf32>
    %21 = math.rsqrt %20 : vector<16x1xf32>
    %22 = vector.broadcast %21 : vector<16x1xf32> to vector<16x32xf32>
    %23 = arith.mulf %18, %22 : vector<16x32xf32>
    %24 = vector.broadcast %1 : vector<1x32xf32> to vector<16x32xf32>
    %25 = arith.mulf %23, %24 : vector<16x32xf32>
    %26 = vector.broadcast %2 : vector<1x32xf32> to vector<16x32xf32>
    %27 = arith.addf %25, %26 : vector<16x32xf32>
    %c0_7 = arith.constant 0 : index
    %c0_8 = arith.constant 0 : index
    %c0_9 = arith.constant 0 : index
    %28 = vector.load %arg3[%c0_7, %c0_8, %c0_9] : memref<2x8x96xf32, #tpu.memory_space<vmem>>, vector<1x8x96xf32>
    %29 = vector.shape_cast %28 : vector<1x8x96xf32> to vector<8x96xf32>
    %30 = vector.extract_strided_slice %29 {offsets = [0, 0], sizes = [1, 96], strides = [1, 1]} : vector<8x96xf32> to vector<1x96xf32>
    %31 = vector.extract_strided_slice %29 {offsets = [1, 0], sizes = [1, 32], strides = [1, 1]} : vector<8x96xf32> to vector<1x32xf32>
    %32 = vector.extract_strided_slice %29 {offsets = [2, 0], sizes = [1, 32], strides = [1, 1]} : vector<8x96xf32> to vector<1x32xf32>
    %33 = vector.extract_strided_slice %29 {offsets = [3, 0], sizes = [1, 32], strides = [1, 1]} : vector<8x96xf32> to vector<1x32xf32>
    %34 = vector.extract_strided_slice %29 {offsets = [4, 0], sizes = [1, 64], strides = [1, 1]} : vector<8x96xf32> to vector<1x64xf32>
    %35 = vector.extract_strided_slice %29 {offsets = [5, 0], sizes = [1, 32], strides = [1, 1]} : vector<8x96xf32> to vector<1x32xf32>
    %36 = vector.extract_strided_slice %29 {offsets = [6, 0], sizes = [1, 32], strides = [1, 1]} : vector<8x96xf32> to vector<1x32xf32>
    %37 = vector.extract_strided_slice %29 {offsets = [7, 0], sizes = [1, 32], strides = [1, 1]} : vector<8x96xf32> to vector<1x32xf32>
    %38 = arith.truncf %27 : vector<16x32xf32> to vector<16x32xbf16>
    %c0_10 = arith.constant 0 : index
    %c0_11 = arith.constant 0 : index
    %c0_12 = arith.constant 0 : index
    %39 = vector.load %arg4[%c0_10, %c0_11, %c0_12] : memref<2x32x96xbf16, #tpu.memory_space<vmem>>, vector<1x32x96xbf16>
    %40 = vector.shape_cast %39 : vector<1x32x96xbf16> to vector<32x96xbf16>
    %cst_13 = arith.constant dense<0.000000e+00> : vector<16x96xf32>
    %41 = tpu.matmul %38, %40, %cst_13 {dimension_numbers = #tpu.dot_dimension_numbers<[1], [0], [0], [1], [0, 0, 1, 1], [], []>} : vector<16x32xbf16>, vector<32x96xbf16>, vector<16x96xf32> -> vector<16x96xf32>
    %42 = vector.broadcast %30 : vector<1x96xf32> to vector<16x96xf32>
    %43 = arith.addf %41, %42 : vector<16x96xf32>
    %44 = arith.truncf %43 : vector<16x96xf32> to vector<16x96xbf16>
    %45 = vector.extract_strided_slice %44 {offsets = [0, 0], sizes = [16, 16], strides = [1, 1]} : vector<16x96xbf16> to vector<16x16xbf16>
    %46 = vector.shape_cast %45 : vector<16x16xbf16> to vector<2x8x16xbf16>
    %47 = vector.extract_strided_slice %44 {offsets = [0, 32], sizes = [16, 16], strides = [1, 1]} : vector<16x96xbf16> to vector<16x16xbf16>
    %48 = vector.shape_cast %47 : vector<16x16xbf16> to vector<2x8x16xbf16>
    %49 = vector.extract_strided_slice %44 {offsets = [0, 64], sizes = [16, 16], strides = [1, 1]} : vector<16x96xbf16> to vector<16x16xbf16>
    %50 = vector.shape_cast %49 : vector<16x16xbf16> to vector<2x8x16xbf16>
    "tpu.trace_start"() <{level = 10 : i32, message = "bqd,bkd->bqk"}> : () -> ()
    %cst_14 = arith.constant dense<0.000000e+00> : vector<2x8x8xf32>
    %51 = tpu.matmul %46, %48, %cst_14 {dimension_numbers = #tpu.dot_dimension_numbers<[2], [2], [1], [1], [0, 0, 0, 1, 1, 1], [0], [0]>} : vector<2x8x16xbf16>, vector<2x8x16xbf16>, vector<2x8x8xf32> -> vector<2x8x8xf32>
    "tpu.trace_stop"() : () -> ()
    %cst_15 = arith.constant dense<0xFF800000> : vector<2x8xf32>
    %52 = vector.multi_reduction <maximumf>, %51, %cst_15 [2] : vector<2x8x8xf32> to vector<2x8xf32>
    %53 = vector.shape_cast %52 : vector<2x8xf32> to vector<2x8x1xf32>
    %54 = vector.broadcast %53 : vector<2x8x1xf32> to vector<2x8x8xf32>
    %55 = arith.subf %51, %54 : vector<2x8x8xf32>
    %56 = math.exp %55 : vector<2x8x8xf32>
    %cst_16 = arith.constant dense<0.000000e+00> : vector<2x8xf32>
    %57 = vector.multi_reduction <add>, %56, %cst_16 [2] : vector<2x8x8xf32> to vector<2x8xf32>
    %58 = vector.shape_cast %57 : vector<2x8xf32> to vector<2x8x1xf32>
    %59 = vector.broadcast %58 : vector<2x8x1xf32> to vector<2x8x8xf32>
    %60 = arith.divf %56, %59 : vector<2x8x8xf32>
    %61 = arith.truncf %60 : vector<2x8x8xf32> to vector<2x8x8xbf16>
    "tpu.trace_start"() <{level = 10 : i32, message = "bqk,bkd->bqd"}> : () -> ()
    %cst_17 = arith.constant dense<0.000000e+00> : vector<2x8x16xf32>
    %62 = tpu.matmul %61, %50, %cst_17 {dimension_numbers = #tpu.dot_dimension_numbers<[2], [1], [1], [2], [0, 0, 0, 1, 1, 2], [0], [0]>} : vector<2x8x8xbf16>, vector<2x8x16xbf16>, vector<2x8x16xf32> -> vector<2x8x16xf32>
    "tpu.trace_stop"() : () -> ()
    %63 = vector.shape_cast %62 : vector<2x8x16xf32> to vector<16x16xf32>
    %64 = vector.extract_strided_slice %44 {offsets = [0, 16], sizes = [16, 16], strides = [1, 1]} : vector<16x96xbf16> to vector<16x16xbf16>
    %65 = vector.shape_cast %64 : vector<16x16xbf16> to vector<2x8x16xbf16>
    %66 = vector.extract_strided_slice %44 {offsets = [0, 48], sizes = [16, 16], strides = [1, 1]} : vector<16x96xbf16> to vector<16x16xbf16>
    %67 = vector.shape_cast %66 : vector<16x16xbf16> to vector<2x8x16xbf16>
    %68 = vector.extract_strided_slice %44 {offsets = [0, 80], sizes = [16, 16], strides = [1, 1]} : vector<16x96xbf16> to vector<16x16xbf16>
    %69 = vector.shape_cast %68 : vector<16x16xbf16> to vector<2x8x16xbf16>
    "tpu.trace_start"() <{level = 10 : i32, message = "bqd,bkd->bqk"}> : () -> ()
    %cst_18 = arith.constant dense<0.000000e+00> : vector<2x8x8xf32>
    %70 = tpu.matmul %65, %67, %cst_18 {dimension_numbers = #tpu.dot_dimension_numbers<[2], [2], [1], [1], [0, 0, 0, 1, 1, 1], [0], [0]>} : vector<2x8x16xbf16>, vector<2x8x16xbf16>, vector<2x8x8xf32> -> vector<2x8x8xf32>
    "tpu.trace_stop"() : () -> ()
    %cst_19 = arith.constant dense<0xFF800000> : vector<2x8xf32>
    %71 = vector.multi_reduction <maximumf>, %70, %cst_19 [2] : vector<2x8x8xf32> to vector<2x8xf32>
    %72 = vector.shape_cast %71 : vector<2x8xf32> to vector<2x8x1xf32>
    %73 = vector.broadcast %72 : vector<2x8x1xf32> to vector<2x8x8xf32>
    %74 = arith.subf %70, %73 : vector<2x8x8xf32>
    %75 = math.exp %74 : vector<2x8x8xf32>
    %cst_20 = arith.constant dense<0.000000e+00> : vector<2x8xf32>
    %76 = vector.multi_reduction <add>, %75, %cst_20 [2] : vector<2x8x8xf32> to vector<2x8xf32>
    %77 = vector.shape_cast %76 : vector<2x8xf32> to vector<2x8x1xf32>
    %78 = vector.broadcast %77 : vector<2x8x1xf32> to vector<2x8x8xf32>
    %79 = arith.divf %75, %78 : vector<2x8x8xf32>
    %80 = arith.truncf %79 : vector<2x8x8xf32> to vector<2x8x8xbf16>
    "tpu.trace_start"() <{level = 10 : i32, message = "bqk,bkd->bqd"}> : () -> ()
    %cst_21 = arith.constant dense<0.000000e+00> : vector<2x8x16xf32>
    %81 = tpu.matmul %80, %69, %cst_21 {dimension_numbers = #tpu.dot_dimension_numbers<[2], [1], [1], [2], [0, 0, 0, 1, 1, 2], [0], [0]>} : vector<2x8x8xbf16>, vector<2x8x16xbf16>, vector<2x8x16xf32> -> vector<2x8x16xf32>
    "tpu.trace_stop"() : () -> ()
    %82 = vector.shape_cast %81 : vector<2x8x16xf32> to vector<16x16xf32>
    %83 = tpu.concatenate %63, %82 in 1 : vector<16x16xf32>, vector<16x16xf32> -> vector<16x32xf32>
    %84 = arith.truncf %83 : vector<16x32xf32> to vector<16x32xbf16>
    %c0_22 = arith.constant 0 : index
    %c0_23 = arith.constant 0 : index
    %c0_24 = arith.constant 0 : index
    %85 = vector.load %arg5[%c0_22, %c0_23, %c0_24] : memref<2x32x32xbf16, #tpu.memory_space<vmem>>, vector<1x32x32xbf16>
    %86 = vector.shape_cast %85 : vector<1x32x32xbf16> to vector<32x32xbf16>
    %cst_25 = arith.constant dense<0.000000e+00> : vector<16x32xf32>
    %87 = tpu.matmul %84, %86, %cst_25 {dimension_numbers = #tpu.dot_dimension_numbers<[1], [0], [0], [1], [0, 0, 1, 1], [], []>} : vector<16x32xbf16>, vector<32x32xbf16>, vector<16x32xf32> -> vector<16x32xf32>
    %88 = vector.broadcast %31 : vector<1x32xf32> to vector<16x32xf32>
    %89 = arith.addf %87, %88 : vector<16x32xf32>
    %90 = arith.addf %27, %89 : vector<16x32xf32>
    %cst_26 = arith.constant dense<0.000000e+00> : vector<16xf32>
    %91 = vector.multi_reduction <add>, %90, %cst_26 [1] : vector<16x32xf32> to vector<16xf32>
    %92 = vector.shape_cast %91 : vector<16xf32> to vector<16x1xf32>
    %cst_27 = arith.constant 3.200000e+01 : f32
    %93 = vector.broadcast %cst_27 : f32 to vector<16x1xf32>
    %94 = arith.divf %92, %93 : vector<16x1xf32>
    %95 = vector.broadcast %94 : vector<16x1xf32> to vector<16x32xf32>
    %96 = arith.subf %90, %95 : vector<16x32xf32>
    %97 = arith.mulf %96, %96 : vector<16x32xf32>
    %cst_28 = arith.constant dense<0.000000e+00> : vector<16xf32>
    %98 = vector.multi_reduction <add>, %97, %cst_28 [1] : vector<16x32xf32> to vector<16xf32>
    %99 = vector.shape_cast %98 : vector<16xf32> to vector<16x1xf32>
    %cst_29 = arith.constant 3.200000e+01 : f32
    %100 = vector.broadcast %cst_29 : f32 to vector<16x1xf32>
    %101 = arith.divf %99, %100 : vector<16x1xf32>
    %102 = vector.broadcast %94 : vector<16x1xf32> to vector<16x32xf32>
    %103 = arith.subf %90, %102 : vector<16x32xf32>
    %cst_30 = arith.constant 9.99999996E-13 : f32
    %104 = vector.broadcast %cst_30 : f32 to vector<16x1xf32>
    %105 = arith.addf %101, %104 : vector<16x1xf32>
    %106 = math.rsqrt %105 : vector<16x1xf32>
    %107 = vector.broadcast %106 : vector<16x1xf32> to vector<16x32xf32>
    %108 = arith.mulf %103, %107 : vector<16x32xf32>
    %109 = vector.broadcast %32 : vector<1x32xf32> to vector<16x32xf32>
    %110 = arith.mulf %108, %109 : vector<16x32xf32>
    %111 = vector.broadcast %33 : vector<1x32xf32> to vector<16x32xf32>
    %112 = arith.addf %110, %111 : vector<16x32xf32>
    %113 = arith.truncf %112 : vector<16x32xf32> to vector<16x32xbf16>
    %c0_31 = arith.constant 0 : index
    %c0_32 = arith.constant 0 : index
    %c0_33 = arith.constant 0 : index
    %114 = vector.load %arg6[%c0_31, %c0_32, %c0_33] : memref<2x32x64xbf16, #tpu.memory_space<vmem>>, vector<1x32x64xbf16>
    %115 = vector.shape_cast %114 : vector<1x32x64xbf16> to vector<32x64xbf16>
    %cst_34 = arith.constant dense<0.000000e+00> : vector<16x64xf32>
    %116 = tpu.matmul %113, %115, %cst_34 {dimension_numbers = #tpu.dot_dimension_numbers<[1], [0], [0], [1], [0, 0, 1, 1], [], []>} : vector<16x32xbf16>, vector<32x64xbf16>, vector<16x64xf32> -> vector<16x64xf32>
    %117 = vector.broadcast %34 : vector<1x64xf32> to vector<16x64xf32>
    %118 = arith.addf %116, %117 : vector<16x64xf32>
    %119 = arith.mulf %118, %118 : vector<16x64xf32>
    %120 = arith.mulf %118, %119 : vector<16x64xf32>
    %cst_35 = arith.constant 4.471500e-02 : f32
    %121 = vector.broadcast %cst_35 : f32 to vector<16x64xf32>
    %122 = arith.mulf %121, %120 : vector<16x64xf32>
    %123 = arith.addf %118, %122 : vector<16x64xf32>
    %cst_36 = arith.constant 0.797884583 : f32
    %124 = vector.broadcast %cst_36 : f32 to vector<16x64xf32>
    %125 = arith.mulf %124, %123 : vector<16x64xf32>
    %126 = math.tanh %125 : vector<16x64xf32>
    %cst_37 = arith.constant 1.000000e+00 : f32
    %127 = vector.broadcast %cst_37 : f32 to vector<16x64xf32>
    %128 = arith.addf %127, %126 : vector<16x64xf32>
    %cst_38 = arith.constant 5.000000e-01 : f32
    %129 = vector.broadcast %cst_38 : f32 to vector<16x64xf32>
    %130 = arith.mulf %129, %128 : vector<16x64xf32>
    %131 = arith.mulf %118, %130 : vector<16x64xf32>
    %132 = arith.truncf %131 : vector<16x64xf32> to vector<16x64xbf16>
    %c0_39 = arith.constant 0 : index
    %c0_40 = arith.constant 0 : index
    %c0_41 = arith.constant 0 : index
    %133 = vector.load %arg7[%c0_39, %c0_40, %c0_41] : memref<2x64x32xbf16, #tpu.memory_space<vmem>>, vector<1x64x32xbf16>
    %134 = vector.shape_cast %133 : vector<1x64x32xbf16> to vector<64x32xbf16>
    %cst_42 = arith.constant dense<0.000000e+00> : vector<16x32xf32>
    %135 = tpu.matmul %132, %134, %cst_42 {dimension_numbers = #tpu.dot_dimension_numbers<[1], [0], [0], [1], [0, 0, 1, 1], [], []>} : vector<16x64xbf16>, vector<64x32xbf16>, vector<16x32xf32> -> vector<16x32xf32>
    %136 = vector.broadcast %35 : vector<1x32xf32> to vector<16x32xf32>
    %137 = arith.addf %135, %136 : vector<16x32xf32>
    %138 = arith.addf %112, %137 : vector<16x32xf32>
    %cst_43 = arith.constant dense<0.000000e+00> : vector<16xf32>
    %139 = vector.multi_reduction <add>, %138, %cst_43 [1] : vector<16x32xf32> to vector<16xf32>
    %140 = vector.shape_cast %139 : vector<16xf32> to vector<16x1xf32>
    %cst_44 = arith.constant 3.200000e+01 : f32
    %141 = vector.broadcast %cst_44 : f32 to vector<16x1xf32>
    %142 = arith.divf %140, %141 : vector<16x1xf32>
    %143 = vector.broadcast %142 : vector<16x1xf32> to vector<16x32xf32>
    %144 = arith.subf %138, %143 : vector<16x32xf32>
    %145 = arith.mulf %144, %144 : vector<16x32xf32>
    %cst_45 = arith.constant dense<0.000000e+00> : vector<16xf32>
    %146 = vector.multi_reduction <add>, %145, %cst_45 [1] : vector<16x32xf32> to vector<16xf32>
    %147 = vector.shape_cast %146 : vector<16xf32> to vector<16x1xf32>
    %cst_46 = arith.constant 3.200000e+01 : f32
    %148 = vector.broadcast %cst_46 : f32 to vector<16x1xf32>
    %149 = arith.divf %147, %148 : vector<16x1xf32>
    %150 = vector.broadcast %142 : vector<16x1xf32> to vector<16x32xf32>
    %151 = arith.subf %138, %150 : vector<16x32xf32>
    %cst_47 = arith.constant 9.99999996E-13 : f32
    %152 = vector.broadcast %cst_47 : f32 to vector<16x1xf32>
    %153 = arith.addf %149, %152 : vector<16x1xf32>
    %154 = math.rsqrt %153 : vector<16x1xf32>
    %155 = vector.broadcast %154 : vector<16x1xf32> to vector<16x32xf32>
    %156 = arith.mulf %151, %155 : vector<16x32xf32>
    %157 = vector.broadcast %36 : vector<1x32xf32> to vector<16x32xf32>
    %158 = arith.mulf %156, %157 : vector<16x32xf32>
    %159 = vector.broadcast %37 : vector<1x32xf32> to vector<16x32xf32>
    %160 = arith.addf %158, %159 : vector<16x32xf32>
    %c1 = arith.constant 1 : index
    %c0_48 = arith.constant 0 : index
    %c0_49 = arith.constant 0 : index
    %161 = vector.load %arg3[%c1, %c0_48, %c0_49] : memref<2x8x96xf32, #tpu.memory_space<vmem>>, vector<1x8x96xf32>
    %162 = vector.shape_cast %161 : vector<1x8x96xf32> to vector<8x96xf32>
    %163 = vector.extract_strided_slice %162 {offsets = [0, 0], sizes = [1, 96], strides = [1, 1]} : vector<8x96xf32> to vector<1x96xf32>
    %164 = vector.extract_strided_slice %162 {offsets = [1, 0], sizes = [1, 32], strides = [1, 1]} : vector<8x96xf32> to vector<1x32xf32>
    %165 = vector.extract_strided_slice %162 {offsets = [2, 0], sizes = [1, 32], strides = [1, 1]} : vector<8x96xf32> to vector<1x32xf32>
    %166 = vector.extract_strided_slice %162 {offsets = [3, 0], sizes = [1, 32], strides = [1, 1]} : vector<8x96xf32> to vector<1x32xf32>
    %167 = vector.extract_strided_slice %162 {offsets = [4, 0], sizes = [1, 64], strides = [1, 1]} : vector<8x96xf32> to vector<1x64xf32>
    %168 = vector.extract_strided_slice %162 {offsets = [5, 0], sizes = [1, 32], strides = [1, 1]} : vector<8x96xf32> to vector<1x32xf32>
    %169 = vector.extract_strided_slice %162 {offsets = [6, 0], sizes = [1, 32], strides = [1, 1]} : vector<8x96xf32> to vector<1x32xf32>
    %170 = vector.extract_strided_slice %162 {offsets = [7, 0], sizes = [1, 32], strides = [1, 1]} : vector<8x96xf32> to vector<1x32xf32>
    %171 = arith.truncf %160 : vector<16x32xf32> to vector<16x32xbf16>
    %c1_50 = arith.constant 1 : index
    %c0_51 = arith.constant 0 : index
    %c0_52 = arith.constant 0 : index
    %172 = vector.load %arg4[%c1_50, %c0_51, %c0_52] : memref<2x32x96xbf16, #tpu.memory_space<vmem>>, vector<1x32x96xbf16>
    %173 = vector.shape_cast %172 : vector<1x32x96xbf16> to vector<32x96xbf16>
    %cst_53 = arith.constant dense<0.000000e+00> : vector<16x96xf32>
    %174 = tpu.matmul %171, %173, %cst_53 {dimension_numbers = #tpu.dot_dimension_numbers<[1], [0], [0], [1], [0, 0, 1, 1], [], []>} : vector<16x32xbf16>, vector<32x96xbf16>, vector<16x96xf32> -> vector<16x96xf32>
    %175 = vector.broadcast %163 : vector<1x96xf32> to vector<16x96xf32>
    %176 = arith.addf %174, %175 : vector<16x96xf32>
    %177 = arith.truncf %176 : vector<16x96xf32> to vector<16x96xbf16>
    %178 = vector.extract_strided_slice %177 {offsets = [0, 0], sizes = [16, 16], strides = [1, 1]} : vector<16x96xbf16> to vector<16x16xbf16>
    %179 = vector.shape_cast %178 : vector<16x16xbf16> to vector<2x8x16xbf16>
    %180 = vector.extract_strided_slice %177 {offsets = [0, 32], sizes = [16, 16], strides = [1, 1]} : vector<16x96xbf16> to vector<16x16xbf16>
    %181 = vector.shape_cast %180 : vector<16x16xbf16> to vector<2x8x16xbf16>
    %182 = vector.extract_strided_slice %177 {offsets = [0, 64], sizes = [16, 16], strides = [1, 1]} : vector<16x96xbf16> to vector<16x16xbf16>
    %183 = vector.shape_cast %182 : vector<16x16xbf16> to vector<2x8x16xbf16>
    "tpu.trace_start"() <{level = 10 : i32, message = "bqd,bkd->bqk"}> : () -> ()
    %cst_54 = arith.constant dense<0.000000e+00> : vector<2x8x8xf32>
    %184 = tpu.matmul %179, %181, %cst_54 {dimension_numbers = #tpu.dot_dimension_numbers<[2], [2], [1], [1], [0, 0, 0, 1, 1, 1], [0], [0]>} : vector<2x8x16xbf16>, vector<2x8x16xbf16>, vector<2x8x8xf32> -> vector<2x8x8xf32>
    "tpu.trace_stop"() : () -> ()
    %cst_55 = arith.constant dense<0xFF800000> : vector<2x8xf32>
    %185 = vector.multi_reduction <maximumf>, %184, %cst_55 [2] : vector<2x8x8xf32> to vector<2x8xf32>
    %186 = vector.shape_cast %185 : vector<2x8xf32> to vector<2x8x1xf32>
    %187 = vector.broadcast %186 : vector<2x8x1xf32> to vector<2x8x8xf32>
    %188 = arith.subf %184, %187 : vector<2x8x8xf32>
    %189 = math.exp %188 : vector<2x8x8xf32>
    %cst_56 = arith.constant dense<0.000000e+00> : vector<2x8xf32>
    %190 = vector.multi_reduction <add>, %189, %cst_56 [2] : vector<2x8x8xf32> to vector<2x8xf32>
    %191 = vector.shape_cast %190 : vector<2x8xf32> to vector<2x8x1xf32>
    %192 = vector.broadcast %191 : vector<2x8x1xf32> to vector<2x8x8xf32>
    %193 = arith.divf %189, %192 : vector<2x8x8xf32>
    %194 = arith.truncf %193 : vector<2x8x8xf32> to vector<2x8x8xbf16>
    "tpu.trace_start"() <{level = 10 : i32, message = "bqk,bkd->bqd"}> : () -> ()
    %cst_57 = arith.constant dense<0.000000e+00> : vector<2x8x16xf32>
    %195 = tpu.matmul %194, %183, %cst_57 {dimension_numbers = #tpu.dot_dimension_numbers<[2], [1], [1], [2], [0, 0, 0, 1, 1, 2], [0], [0]>} : vector<2x8x8xbf16>, vector<2x8x16xbf16>, vector<2x8x16xf32> -> vector<2x8x16xf32>
    "tpu.trace_stop"() : () -> ()
    %196 = vector.shape_cast %195 : vector<2x8x16xf32> to vector<16x16xf32>
    %197 = vector.extract_strided_slice %177 {offsets = [0, 16], sizes = [16, 16], strides = [1, 1]} : vector<16x96xbf16> to vector<16x16xbf16>
    %198 = vector.shape_cast %197 : vector<16x16xbf16> to vector<2x8x16xbf16>
    %199 = vector.extract_strided_slice %177 {offsets = [0, 48], sizes = [16, 16], strides = [1, 1]} : vector<16x96xbf16> to vector<16x16xbf16>
    %200 = vector.shape_cast %199 : vector<16x16xbf16> to vector<2x8x16xbf16>
    %201 = vector.extract_strided_slice %177 {offsets = [0, 80], sizes = [16, 16], strides = [1, 1]} : vector<16x96xbf16> to vector<16x16xbf16>
    %202 = vector.shape_cast %201 : vector<16x16xbf16> to vector<2x8x16xbf16>
    "tpu.trace_start"() <{level = 10 : i32, message = "bqd,bkd->bqk"}> : () -> ()
    %cst_58 = arith.constant dense<0.000000e+00> : vector<2x8x8xf32>
    %203 = tpu.matmul %198, %200, %cst_58 {dimension_numbers = #tpu.dot_dimension_numbers<[2], [2], [1], [1], [0, 0, 0, 1, 1, 1], [0], [0]>} : vector<2x8x16xbf16>, vector<2x8x16xbf16>, vector<2x8x8xf32> -> vector<2x8x8xf32>
    "tpu.trace_stop"() : () -> ()
    %cst_59 = arith.constant dense<0xFF800000> : vector<2x8xf32>
    %204 = vector.multi_reduction <maximumf>, %203, %cst_59 [2] : vector<2x8x8xf32> to vector<2x8xf32>
    %205 = vector.shape_cast %204 : vector<2x8xf32> to vector<2x8x1xf32>
    %206 = vector.broadcast %205 : vector<2x8x1xf32> to vector<2x8x8xf32>
    %207 = arith.subf %203, %206 : vector<2x8x8xf32>
    %208 = math.exp %207 : vector<2x8x8xf32>
    %cst_60 = arith.constant dense<0.000000e+00> : vector<2x8xf32>
    %209 = vector.multi_reduction <add>, %208, %cst_60 [2] : vector<2x8x8xf32> to vector<2x8xf32>
    %210 = vector.shape_cast %209 : vector<2x8xf32> to vector<2x8x1xf32>
    %211 = vector.broadcast %210 : vector<2x8x1xf32> to vector<2x8x8xf32>
    %212 = arith.divf %208, %211 : vector<2x8x8xf32>
    %213 = arith.truncf %212 : vector<2x8x8xf32> to vector<2x8x8xbf16>
    "tpu.trace_start"() <{level = 10 : i32, message = "bqk,bkd->bqd"}> : () -> ()
    %cst_61 = arith.constant dense<0.000000e+00> : vector<2x8x16xf32>
    %214 = tpu.matmul %213, %202, %cst_61 {dimension_numbers = #tpu.dot_dimension_numbers<[2], [1], [1], [2], [0, 0, 0, 1, 1, 2], [0], [0]>} : vector<2x8x8xbf16>, vector<2x8x16xbf16>, vector<2x8x16xf32> -> vector<2x8x16xf32>
    "tpu.trace_stop"() : () -> ()
    %215 = vector.shape_cast %214 : vector<2x8x16xf32> to vector<16x16xf32>
    %216 = tpu.concatenate %196, %215 in 1 : vector<16x16xf32>, vector<16x16xf32> -> vector<16x32xf32>
    %217 = arith.truncf %216 : vector<16x32xf32> to vector<16x32xbf16>
    %c1_62 = arith.constant 1 : index
    %c0_63 = arith.constant 0 : index
    %c0_64 = arith.constant 0 : index
    %218 = vector.load %arg5[%c1_62, %c0_63, %c0_64] : memref<2x32x32xbf16, #tpu.memory_space<vmem>>, vector<1x32x32xbf16>
    %219 = vector.shape_cast %218 : vector<1x32x32xbf16> to vector<32x32xbf16>
    %cst_65 = arith.constant dense<0.000000e+00> : vector<16x32xf32>
    %220 = tpu.matmul %217, %219, %cst_65 {dimension_numbers = #tpu.dot_dimension_numbers<[1], [0], [0], [1], [0, 0, 1, 1], [], []>} : vector<16x32xbf16>, vector<32x32xbf16>, vector<16x32xf32> -> vector<16x32xf32>
    %221 = vector.broadcast %164 : vector<1x32xf32> to vector<16x32xf32>
    %222 = arith.addf %220, %221 : vector<16x32xf32>
    %223 = arith.addf %160, %222 : vector<16x32xf32>
    %cst_66 = arith.constant dense<0.000000e+00> : vector<16xf32>
    %224 = vector.multi_reduction <add>, %223, %cst_66 [1] : vector<16x32xf32> to vector<16xf32>
    %225 = vector.shape_cast %224 : vector<16xf32> to vector<16x1xf32>
    %cst_67 = arith.constant 3.200000e+01 : f32
    %226 = vector.broadcast %cst_67 : f32 to vector<16x1xf32>
    %227 = arith.divf %225, %226 : vector<16x1xf32>
    %228 = vector.broadcast %227 : vector<16x1xf32> to vector<16x32xf32>
    %229 = arith.subf %223, %228 : vector<16x32xf32>
    %230 = arith.mulf %229, %229 : vector<16x32xf32>
    %cst_68 = arith.constant dense<0.000000e+00> : vector<16xf32>
    %231 = vector.multi_reduction <add>, %230, %cst_68 [1] : vector<16x32xf32> to vector<16xf32>
    %232 = vector.shape_cast %231 : vector<16xf32> to vector<16x1xf32>
    %cst_69 = arith.constant 3.200000e+01 : f32
    %233 = vector.broadcast %cst_69 : f32 to vector<16x1xf32>
    %234 = arith.divf %232, %233 : vector<16x1xf32>
    %235 = vector.broadcast %227 : vector<16x1xf32> to vector<16x32xf32>
    %236 = arith.subf %223, %235 : vector<16x32xf32>
    %cst_70 = arith.constant 9.99999996E-13 : f32
    %237 = vector.broadcast %cst_70 : f32 to vector<16x1xf32>
    %238 = arith.addf %234, %237 : vector<16x1xf32>
    %239 = math.rsqrt %238 : vector<16x1xf32>
    %240 = vector.broadcast %239 : vector<16x1xf32> to vector<16x32xf32>
    %241 = arith.mulf %236, %240 : vector<16x32xf32>
    %242 = vector.broadcast %165 : vector<1x32xf32> to vector<16x32xf32>
    %243 = arith.mulf %241, %242 : vector<16x32xf32>
    %244 = vector.broadcast %166 : vector<1x32xf32> to vector<16x32xf32>
    %245 = arith.addf %243, %244 : vector<16x32xf32>
    %246 = arith.truncf %245 : vector<16x32xf32> to vector<16x32xbf16>
    %c1_71 = arith.constant 1 : index
    %c0_72 = arith.constant 0 : index
    %c0_73 = arith.constant 0 : index
    %247 = vector.load %arg6[%c1_71, %c0_72, %c0_73] : memref<2x32x64xbf16, #tpu.memory_space<vmem>>, vector<1x32x64xbf16>
    %248 = vector.shape_cast %247 : vector<1x32x64xbf16> to vector<32x64xbf16>
    %cst_74 = arith.constant dense<0.000000e+00> : vector<16x64xf32>
    %249 = tpu.matmul %246, %248, %cst_74 {dimension_numbers = #tpu.dot_dimension_numbers<[1], [0], [0], [1], [0, 0, 1, 1], [], []>} : vector<16x32xbf16>, vector<32x64xbf16>, vector<16x64xf32> -> vector<16x64xf32>
    %250 = vector.broadcast %167 : vector<1x64xf32> to vector<16x64xf32>
    %251 = arith.addf %249, %250 : vector<16x64xf32>
    %252 = arith.mulf %251, %251 : vector<16x64xf32>
    %253 = arith.mulf %251, %252 : vector<16x64xf32>
    %cst_75 = arith.constant 4.471500e-02 : f32
    %254 = vector.broadcast %cst_75 : f32 to vector<16x64xf32>
    %255 = arith.mulf %254, %253 : vector<16x64xf32>
    %256 = arith.addf %251, %255 : vector<16x64xf32>
    %cst_76 = arith.constant 0.797884583 : f32
    %257 = vector.broadcast %cst_76 : f32 to vector<16x64xf32>
    %258 = arith.mulf %257, %256 : vector<16x64xf32>
    %259 = math.tanh %258 : vector<16x64xf32>
    %cst_77 = arith.constant 1.000000e+00 : f32
    %260 = vector.broadcast %cst_77 : f32 to vector<16x64xf32>
    %261 = arith.addf %260, %259 : vector<16x64xf32>
    %cst_78 = arith.constant 5.000000e-01 : f32
    %262 = vector.broadcast %cst_78 : f32 to vector<16x64xf32>
    %263 = arith.mulf %262, %261 : vector<16x64xf32>
    %264 = arith.mulf %251, %263 : vector<16x64xf32>
    %265 = arith.truncf %264 : vector<16x64xf32> to vector<16x64xbf16>
    %c1_79 = arith.constant 1 : index
    %c0_80 = arith.constant 0 : index
    %c0_81 = arith.constant 0 : index
    %266 = vector.load %arg7[%c1_79, %c0_80, %c0_81] : memref<2x64x32xbf16, #tpu.memory_space<vmem>>, vector<1x64x32xbf16>
    %267 = vector.shape_cast %266 : vector<1x64x32xbf16> to vector<64x32xbf16>
    %cst_82 = arith.constant dense<0.000000e+00> : vector<16x32xf32>
    %268 = tpu.matmul %265, %267, %cst_82 {dimension_numbers = #tpu.dot_dimension_numbers<[1], [0], [0], [1], [0, 0, 1, 1], [], []>} : vector<16x64xbf16>, vector<64x32xbf16>, vector<16x32xf32> -> vector<16x32xf32>
    %269 = vector.broadcast %168 : vector<1x32xf32> to vector<16x32xf32>
    %270 = arith.addf %268, %269 : vector<16x32xf32>
    %271 = arith.addf %245, %270 : vector<16x32xf32>
    %cst_83 = arith.constant dense<0.000000e+00> : vector<16xf32>
    %272 = vector.multi_reduction <add>, %271, %cst_83 [1] : vector<16x32xf32> to vector<16xf32>
    %273 = vector.shape_cast %272 : vector<16xf32> to vector<16x1xf32>
    %cst_84 = arith.constant 3.200000e+01 : f32
    %274 = vector.broadcast %cst_84 : f32 to vector<16x1xf32>
    %275 = arith.divf %273, %274 : vector<16x1xf32>
    %276 = vector.broadcast %275 : vector<16x1xf32> to vector<16x32xf32>
    %277 = arith.subf %271, %276 : vector<16x32xf32>
    %278 = arith.mulf %277, %277 : vector<16x32xf32>
    %cst_85 = arith.constant dense<0.000000e+00> : vector<16xf32>
    %279 = vector.multi_reduction <add>, %278, %cst_85 [1] : vector<16x32xf32> to vector<16xf32>
    %280 = vector.shape_cast %279 : vector<16xf32> to vector<16x1xf32>
    %cst_86 = arith.constant 3.200000e+01 : f32
    %281 = vector.broadcast %cst_86 : f32 to vector<16x1xf32>
    %282 = arith.divf %280, %281 : vector<16x1xf32>
    %283 = vector.broadcast %275 : vector<16x1xf32> to vector<16x32xf32>
    %284 = arith.subf %271, %283 : vector<16x32xf32>
    %cst_87 = arith.constant 9.99999996E-13 : f32
    %285 = vector.broadcast %cst_87 : f32 to vector<16x1xf32>
    %286 = arith.addf %282, %285 : vector<16x1xf32>
    %287 = math.rsqrt %286 : vector<16x1xf32>
    %288 = vector.broadcast %287 : vector<16x1xf32> to vector<16x32xf32>
    %289 = arith.mulf %284, %288 : vector<16x32xf32>
    %290 = vector.broadcast %169 : vector<1x32xf32> to vector<16x32xf32>
    %291 = arith.mulf %289, %290 : vector<16x32xf32>
    %292 = vector.broadcast %170 : vector<1x32xf32> to vector<16x32xf32>
    %293 = arith.addf %291, %292 : vector<16x32xf32>
    %c0_88 = arith.constant 0 : index
    %c0_89 = arith.constant 0 : index
    %294 = vector.load %arg8[%c0_88, %c0_89] : memref<32x34xbf16, #tpu.memory_space<vmem>>, vector<32x34xbf16>
    %295 = vector.shape_cast %293 : vector<16x32xf32> to vector<2x8x32xf32>
    %296 = vector.extract_strided_slice %295 {offsets = [0, 0, 0], sizes = [2, 1, 32], strides = [1, 1, 1]} : vector<2x8x32xf32> to vector<2x1x32xf32>
    %297 = vector.shape_cast %296 : vector<2x1x32xf32> to vector<2x32xf32>
    %298 = arith.truncf %297 : vector<2x32xf32> to vector<2x32xbf16>
    %299 = vector.extract_strided_slice %294 {offsets = [0, 0], sizes = [32, 32], strides = [1, 1]} : vector<32x34xbf16> to vector<32x32xbf16>
    %cst_90 = arith.constant dense<0.000000e+00> : vector<2x32xf32>
    %300 = tpu.matmul %298, %299, %cst_90 {dimension_numbers = #tpu.dot_dimension_numbers<[1], [0], [0], [1], [0, 0, 1, 1], [], []>} : vector<2x32xbf16>, vector<32x32xbf16>, vector<2x32xf32> -> vector<2x32xf32>
    %301 = vector.broadcast %3 : vector<1x32xf32> to vector<2x32xf32>
    %302 = arith.addf %300, %301 : vector<2x32xf32>
    %303 = math.tanh %302 : vector<2x32xf32>
    %304 = arith.truncf %303 : vector<2x32xf32> to vector<2x32xbf16>
    %305 = vector.extract_strided_slice %294 {offsets = [0, 32], sizes = [32, 2], strides = [1, 1]} : vector<32x34xbf16> to vector<32x2xbf16>
    %cst_91 = arith.constant dense<0.000000e+00> : vector<2x2xf32>
    %306 = tpu.matmul %304, %305, %cst_91 {dimension_numbers = #tpu.dot_dimension_numbers<[1], [0], [0], [1], [0, 0, 1, 1], [], []>} : vector<2x32xbf16>, vector<32x2xbf16>, vector<2x2xf32> -> vector<2x2xf32>
    %307 = vector.broadcast %4 : vector<1x2xf32> to vector<2x2xf32>
    %308 = arith.addf %306, %307 : vector<2x2xf32>
    %c0_92 = arith.constant 0 : index
    %c0_93 = arith.constant 0 : index
    %309 = vector.load %arg9[%c0_92, %c0_93] : memref<2x2xf32, #tpu.memory_space<vmem>>, vector<2x2xf32>
    tpu.vector_store %arg9[%c0_92, %c0_93], %308 {strides = array<i32>} : memref<2x2xf32, #tpu.memory_space<vmem>>, vector<2x2xf32>,
    %c0_94 = arith.constant 0 : index
    %c0_95 = arith.constant 0 : index
    %310 = vector.load %arg0[%c0_94, %c0_95] : memref<2x1xi32, #tpu.memory_space<vmem>>, vector<2x1xi32>
    %cst_96 = arith.constant dense<0xFF800000> : vector<2xf32>
    %311 = vector.multi_reduction <maximumf>, %308, %cst_96 [1] : vector<2x2xf32> to vector<2xf32>
    %312 = vector.shape_cast %311 : vector<2xf32> to vector<2x1xf32>
    %313 = vector.broadcast %312 : vector<2x1xf32> to vector<2x2xf32>
    %314 = arith.subf %308, %313 : vector<2x2xf32>
    %315 = math.exp %314 : vector<2x2xf32>
    %cst_97 = arith.constant dense<0.000000e+00> : vector<2xf32>
    %316 = vector.multi_reduction <add>, %315, %cst_97 [1] : vector<2x2xf32> to vector<2xf32>
    %317 = vector.shape_cast %316 : vector<2xf32> to vector<2x1xf32>
    %318 = math.log %317 : vector<2x1xf32>
    %319 = arith.addf %318, %312 : vector<2x1xf32>
    %320 = tpu.iota {dimensions = array<i32: 1>} : vector<2x2xi32>
    %321 = vector.broadcast %310 : vector<2x1xi32> to vector<2x2xi32>
    %322 = arith.cmpi eq, %320, %321 : vector<2x2xi32>
    %cst_98 = arith.constant 0.000000e+00 : f32
    %323 = vector.broadcast %cst_98 : f32 to vector<2x2xf32>
    %324 = arith.select %322, %308, %323 : vector<2x2xi1>, vector<2x2xf32>
    %cst_99 = arith.constant dense<0.000000e+00> : vector<2xf32>
    %325 = vector.multi_reduction <add>, %324, %cst_99 [1] : vector<2x2xf32> to vector<2xf32>
    %326 = vector.shape_cast %325 : vector<2xf32> to vector<2x1xf32>
    %327 = arith.subf %319, %326 : vector<2x1xf32>
    %c0_100 = arith.constant 0 : index
    %c0_101 = arith.constant 0 : index
    %328 = vector.load %arg10[%c0_100, %c0_101] : memref<2x1xf32, #tpu.memory_space<vmem>>, vector<2x1xf32>
    tpu.vector_store %arg10[%c0_100, %c0_101], %327 {strides = array<i32>} : memref<2x1xf32, #tpu.memory_space<vmem>>, vector<2x1xf32>,
    return
  }
}

</mosaic_0001>

<bundles_post_ra>
// kernel: learner_model_forward.1
= control target key start
LH: loop header
LB: loop body
LE: loop exit
PB: predicated region body
PF: predicated region fallthrough
CT: control target
= control target key end

     0   :  { %vm39_vm0 = vcmask 261120   ;;  %s2010_s0 = inlined_call_operand.vmem [shape: s32[2,1], index: 0, kind: input, shape index: {}]   ;;  %s2011_s1 = inlined_call_operand.vmem [shape: f32[16,32], index: 1, kind: input, shape index: {}]   ;;  %s2012_s2 = inlined_call_operand.vmem [shape: f32[4,32], index: 2, kind: input, shape index: {}]   ;;  %s2013_s3 = inlined_call_operand.vmem [shape: f32[2,8,96], index: 3, kind: input, shape index: {}]   ;;  %s2014_s4 = inlined_call_operand.vmem [shape: bf16[2,32,96], index: 4, kind: input, shape index: {}]   ;;  %s2015_s5 = inlined_call_operand.vmem [shape: bf16[2,32,32], index: 5, kind: input, shape index: {}]   ;;  %s2016_s6 = inlined_call_operand.vmem [shape: bf16[2,32,64], index: 6, kind: input, shape index: {}]   ;;  %s2017_s7 = inlined_call_operand.vmem [shape: bf16[2,64,32], index: 7, kind: input, shape index: {}]   ;;  %s2018_s8 = inlined_call_operand.vmem [shape: bf16[32,34], index: 8, kind: input, shape index: {}]   ;;  %s2019_s9 = inlined_call_operand.hbm [shape: f32[2,2], index: 9, kind: output, shape index: {0}]   ;;  %s2020_s10 = inlined_call_operand.vmem [shape: f32[2,1], index: 10, kind: output, shape index: {1}]  }
   0x1   :  { %v37_v0 = vld [vmem:[%s2011_s1] sm:$0xff] }
   0x2   :  { %16 = vsyncpa [#allocation3], 0  ;;  %v40_v1 = vsel %vm39_vm0, %v37_v0, 0.0  ;;  %v38_v2 = vld [vmem:[%s2011_s1 + $0x8] sm:$0xff]  ;;  %v1633_v4 = vmov 32.0   ;;  %v1495_v23 = vld [vmem:[%s2014_s4] sm:$0xff] }
   0x3   :  { %41 = vadd.xlane.f32.xlu0 %v40_v1  ;;  %v43_v3 = vsel %vm39_vm0, %v38_v2, 0.0  ;;  %1538 = vrcp.f32 %v1633_v4  ;;  %v1496_v21 = vld [vmem:[%s2014_s4 + $0x8] sm:$0xff]  ;;  %v36_v40 = vld [vmem:[%s2012_s2] sm:$0xf]  ;;  %s1634_s24 = smov 80   ;;  %s1635_s25 = smov 96  }
   0x4   :  { %125 = vmatpush.bf16.msra.mxu0 %v1496_v21  ;;  %v91_v43 = vperm.slane %v36_v40, 0  ;;  %v94_v48 = vperm.slane %v36_v40, 1  ;;  %v1732_v53 = vld [vmem:[%s2013_s3] sm:$0xff]  ;;  %s1636_s26 = smov 112   ;;  %vm140_vm8 = vcmask 130048   ;;  %vm184_vm9 = vcmask 64512  }
   0x5   :  { %v103_v54 = vperm.slane %v1732_v53, 0  ;;  %s1637_s27 = smov 64   ;;  %s1638_s28 = smov 48   ;;  %vm240_vm10 = vcmask 1043456  }
   0x6   :  { %s1639_s11 = smov 16   ;;  %s1641_s13 = smov [#allocation2]  }
   0x7   :  { %s1345_s14 = sshll.u32 %s1641_s13, 4  ;;  %s1346_s14 = int_to_ptr.vmem [resolvable:$true] %s1345_s14 }
   0x8   :  { %126 = vmatpush.bf16.msra.mxu0 %v1495_v23 }
   0x9   :  { %v1539_v5 = vpop.eup %1538 }
   0xa   :  { %v47_v6 = vmul.f32 32.0, %v1539_v5  ;;  %vm51_vm1 = vweird.f32 %v1539_v5 }
   0xb   :  { %44 = vadd.xlane.f32.xlu0 %v43_v3 }
   0xc   :  { %v48_v7 = vsub.f32 1.0, %v47_v6 }
   0xe   :  { %v49_v8 = vmul.f32 %v1539_v5, %v48_v7 }
  0x10   :  { %v50_v9 = vadd.f32 %v1539_v5, %v49_v8 }
  0x12   :  { %v1705_v10 = vsel %vm51_vm1, %v1539_v5, %v50_v9 }
  0x76   :  { %v42_v11 = vpop.xlane.xlu0 %41 }
  0x77   :  { %v53_v12 = vmul.f32 %v1705_v10, %v42_v11 }
  0x79   :  { %v55_v13 = vsub.f32 %v37_v0, %v53_v12 }
  0x7b   :  { %v57_v14 = vmul.f32 %v55_v13, %v55_v13 }
  0x7d   :  { %v59_v15 = vsel %vm39_vm0, %v57_v14, 0.0 }
  0x7e   :  { %60 = vadd.xlane.f32.xlu1 %v59_v15  ;;  %v45_v16 = vpop.xlane.xlu0 %44 }
  0x7f   :  { %v54_v17 = vmul.f32 %v1705_v10, %v45_v16 }
  0x81   :  { %v56_v18 = vsub.f32 %v38_v2, %v54_v17 }
  0x83   :  { %v58_v19 = vmul.f32 %v56_v18, %v56_v18 }
  0x85   :  { %v62_v20 = vsel %vm39_vm0, %v58_v19, 0.0 }
  0x86   :  { %63 = vadd.xlane.f32.xlu1 %v62_v20 }
  0xf1   :  { %v61_v22 = vpop.xlane.xlu1 %60 }
  0xf2   :  { %v65_v24 = vmul.f32 %v61_v22, %v1705_v10 }
  0xf4   :  { %v67_v25 = vadd.f32 1e-12, %v65_v24 }
  0xf6   :  { %1540 = vrsqrt.f32 %v67_v25  ;;  %vm75_vm3 = vweird.f32 %v67_v25 }
  0xf9   :  { %v64_v26 = vpop.xlane.xlu1 %63 }
  0xfa   :  { %v66_v27 = vmul.f32 %v64_v26, %v1705_v10 }
  0xfc   :  { %v1541_v28 = vpop.eup %1540  ;;  %v68_v29 = vadd.f32 1e-12, %v66_v27 }
  0xfd   :  { %v70_v30 = vmul.f32 %v1541_v28, %v67_v25  ;;  %vm76_vm2 = vweird.f32 %v1541_v28 }
  0xfe   :  { %1542 = vrsqrt.f32 %v68_v29  ;;  %vm77_vm4 = vmor %vm75_vm3, %vm76_vm2  ;;  %vm85_vm6 = vweird.f32 %v68_v29 }
  0xff   :  { %v71_v31 = vmul.f32 %v1541_v28, %v70_v30 }
 0x101   :  { %v72_v32 = vmul.f32 0.5, %v71_v31 }
 0x103   :  { %v73_v33 = vsub.f32 1.5, %v72_v32 }
 0x104   :  { %v1543_v34 = vpop.eup %1542 }
 0x105   :  { %v74_v35 = vmul.f32 %v1541_v28, %v73_v33  ;;  %v80_v36 = vmul.f32 %v1543_v34, %v68_v29  ;;  %vm86_vm5 = vweird.f32 %v1543_v34 }
 0x106   :  { %vm87_vm7 = vmor %vm85_vm6, %vm86_vm5 }
 0x107   :  { %v81_v37 = vmul.f32 %v1543_v34, %v80_v36  ;;  %v78_v38 = vsel %vm77_vm4, %v1541_v28, %v74_v35 }
 0x108   :  { %v89_v42 = vmul.f32 %v78_v38, %v55_v13 }
 0x109   :  { %v82_v39 = vmul.f32 0.5, %v81_v37 }
 0x10a   :  { %v92_v47 = vmul.f32 %v91_v43, %v89_v42 }
 0x10b   :  { %v83_v41 = vsub.f32 1.5, %v82_v39 }
 0x10c   :  { %v1722_v50 = vadd.f32 %v94_v48, %v92_v47 }
 0x10d   :  { %v84_v44 = vmul.f32 %v1543_v34, %v83_v41 }
 0x10f   :  { %v88_v45 = vsel %vm87_vm7, %v1543_v34, %v84_v44 }
 0x110   :  { %v90_v46 = vmul.f32 %v88_v45, %v56_v18 }
 0x112   :  { %v93_v49 = vmul.f32 %v91_v43, %v90_v46 }
 0x114   :  { %v1724_v51 = vadd.f32 %v94_v48, %v93_v49 }
 0x116   :  { %v98_v52 = vpack.c.bf16 %v1724_v51, %v1722_v50 }
 0x118   :  { %1368 = vmatmul.msk.bf16.vlgmr.msra.gmra.mxu0 %vm39_vm0, %v98_v52 }
 0x195   :  { %v128_v55 = vpop.f32.mrf.mxu0 }
 0x196   :  { %v129_v56 = vadd.f32 %v128_v55, %v103_v54 }
 0x198   :  { %v133_v57 = vpack.c.bf16 %v129_v56, %v129_v56 }
 0x19a   :  { %v136_v58 = vunpack.c.l.b16 %v133_v57 }
 0x19c   :  { %v1735_v59 = vpack.c.b16 %v136_v58, %v136_v58 }
 0x19d   :  { %v130_v60 = vpop.f32.mrf.mxu0 }
 0x19e   :  { %v131_v61 = vadd.f32 %v130_v60, %v103_v54  ;;  %280 = vrot.lane.b32.xlu0 %v1735_v59, %s1634_s24  ;;  %138 = vrot.lane.b32.xlu2 %v1735_v59, %s1635_s25 }
 0x1a0   :  { %v134_v62 = vpack.c.bf16 %v131_v61, %v131_v61 }
 0x1a2   :  { %v161_v63 = vunpack.c.l.b16 %v134_v62 }
 0x1a4   :  { %v1741_v0 = vpack.c.b16 %v161_v63, %v161_v63 }
 0x1a6   :  { %303 = vrot.lane.b32.xlu1 %v1741_v0, %s1634_s24  ;;  %163 = vrot.lane.b32.xlu2 %v1741_v0, %s1635_s25 }
 0x1ae   :  { %278 = vrot.lane.b32.xlu2 %v1735_v59, %s1636_s26 }
 0x1b6   :  { %301 = vrot.lane.b32.xlu2 %v1741_v0, %s1636_s26 }
 0x1f8   :  { %v139_v1 = vpop.permute.xlu2 %138 }
 0x1f9   :  { %v145_v2 = vsel %vm140_vm8, %v139_v1, 0 }
 0x1fa   :  { %154 = vmatpush.bf16.xpose.msra.mxu1 %v145_v2 }
 0x200   :  { %v164_v3 = vpop.permute.xlu2 %163 }
 0x201   :  { %1369 = vmatmul.msk.bf16.vlgmr.msra.gmra.mxu1 %vm140_vm8, %v133_v57  ;;  %v169_v4 = vsel %vm140_vm8, %v164_v3, 0 }
 0x202   :  { %178 = vmatpush.bf16.xpose.msra.mxu2 %v169_v4 }
 0x208   :  { %v279_v7 = vpop.permute.xlu2 %278 }
 0x209   :  { %1370 = vmatmul.msk.bf16.vlgmr.msra.gmra.mxu2 %vm140_vm8, %v134_v62 }
 0x210   :  { %v281_v5 = vpop.permute.xlu0 %280  ;;  %v302_v11 = vpop.permute.xlu2 %301 }
 0x211   :  { %v286_v6 = vsel %vm140_vm8, %v281_v5, 0 }
 0x212   :  { %295 = vmatpush.bf16.xpose.msrb.mxu0 %v286_v6 }
 0x218   :  { %v304_v8 = vpop.permute.xlu1 %303 }
 0x219   :  { %1373 = vmatmul.msk.bf16.vlgmr.msrb.gmra.mxu0 %vm140_vm8, %v279_v7  ;;  %v309_v9 = vsel %vm140_vm8, %v304_v8, 0 }
 0x21a   :  { %318 = vmatpush.bf16.xpose.msrb.mxu1 %v309_v9 }
 0x221   :  { %1374 = vmatmul.msk.bf16.vlgmr.msrb.gmra.mxu1 %vm140_vm8, %v302_v11 }
 0x27e   :  { %v156_v12 = vpop.f32.mrf.mxu1 }
 0x27f   :  { %v185_v13 = vsel %vm184_vm9, %v156_v12, -inf }
 0x280   :  { %186 = vmax.xlane.f32.xlu2 %v185_v13 }
 0x286   :  { %v158_v14 = vpop.f32.mrf.mxu1 }
 0x28c   :  { %v180_v15 = vpop.f32.mrf.mxu2 }
 0x28d   :  { %v188_v16 = vsel %vm184_vm9, %v180_v15, -inf }
 0x28e   :  { %189 = vmax.xlane.f32.xlu0 %v188_v16 }
 0x294   :  { %v182_v17 = vpop.f32.mrf.mxu2 }
 0x296   :  { %v297_v18 = vpop.f32.mrf.mxu0 }
 0x297   :  { %v324_v19 = vsel %vm184_vm9, %v297_v18, -inf }
 0x298   :  { %325 = vmax.xlane.f32.xlu1 %v324_v19 }
 0x29e   :  { %v299_v20 = vpop.f32.mrf.mxu0  ;;  %v320_v21 = vpop.f32.mrf.mxu1 }
 0x29f   :  { %v327_v22 = vsel %vm184_vm9, %v320_v21, -inf }
 0x2a0   :  { %328 = vmax.xlane.f32.xlu2 %v327_v22 }
 0x2a6   :  { %v322_v23 = vpop.f32.mrf.mxu1 }
 0x2b1   :  { %235 = vrot.lane.b32.xlu1 %v1735_v59, %s1637_s27 }
 0x2b9   :  { %395 = vrot.lane.b32.xlu1 %v1741_v0, %s1638_s28 }
 0x2f3   :  { %v187_v24 = vpop.xlane.xlu2 %186 }
 0x2f4   :  { %v191_v25 = vsub.f32 %v156_v12, %v187_v24 }
 0x2f6   :  { %v193_v26 = vmul.f32 1.442695, %v191_v25 }
 0x2f8   :  { %1544 = vpow2.f32 %v193_v26 }
 0x2fe   :  { %v1545_v27 = vpop.eup %1544 }
 0x2ff   :  { %v197_v28 = vsel %vm184_vm9, %v1545_v27, 0.0 }
 0x300   :  { %198 = vadd.xlane.f32.xlu0 %v197_v28 }
 0x301   :  { %v190_v29 = vpop.xlane.xlu0 %189 }
 0x302   :  { %v192_v30 = vsub.f32 %v180_v15, %v190_v29 }
 0x304   :  { %v195_v31 = vmul.f32 1.442695, %v192_v30 }
 0x306   :  { %1546 = vpow2.f32 %v195_v31 }
 0x30b   :  { %v326_v32 = vpop.xlane.xlu1 %325 }
 0x30c   :  { %v1768_v33 = vpop.eup %1546  ;;  %v330_v34 = vsub.f32 %v297_v18, %v326_v32 }
 0x30d   :  { %v200_v35 = vsel %vm184_vm9, %v1768_v33, 0.0 }
 0x30e   :  { %v332_v36 = vmul.f32 1.442695, %v330_v34  ;;  %201 = vadd.xlane.f32.xlu2 %v200_v35 }
 0x310   :  { %1548 = vpow2.f32 %v332_v36 }
 0x313   :  { %v329_v37 = vpop.xlane.xlu2 %328 }
 0x314   :  { %v331_v38 = vsub.f32 %v320_v21, %v329_v37 }
 0x316   :  { %v1772_v39 = vpop.eup %1548  ;;  %v334_v40 = vmul.f32 1.442695, %v331_v38 }
 0x317   :  { %v336_v41 = vsel %vm184_vm9, %v1772_v39, 0.0 }
 0x318   :  { %1550 = vpow2.f32 %v334_v40  ;;  %337 = vadd.xlane.f32.xlu0 %v336_v41 }
 0x31e   :  { %v1776_v42 = vpop.eup %1550 }
 0x31f   :  { %v339_v43 = vsel %vm184_vm9, %v1776_v42, 0.0 }
 0x320   :  { %340 = vadd.xlane.f32.xlu2 %v339_v43 }
 0x323   :  { %v236_v44 = vpop.permute.xlu1 %235 }
 0x324   :  { %v242_v45 = vsel %vm240_vm10, %v236_v44, 0 }
 0x325   :  { %251 = vmatpush.bf16.msra.mxu3 %v242_v45 }
 0x32b   :  { %v396_v26 = vpop.permute.xlu1 %395 }
 0x32c   :  { %257 = vrot.lane.b32.xlu0 %v1741_v0, %s1637_s27  ;;  %v401_v35 = vsel %vm240_vm10, %v396_v26, 0 }
 0x338   :  { %374 = vrot.lane.b32.xlu2 %v1735_v59, %s1638_s28 }
 0x373   :  { %v199_v46 = vpop.xlane.xlu0 %198 }
 0x374   :  { %1552 = vrcp.f32 %v199_v46  ;;  %v214_v52 = vand.u32 2147483648, %v199_v46  ;;  %v212_v55 = vand.u32 2147483647, %v199_v46  ;;  %vm208_vm12 = vweird.f32 %v199_v46 }
 0x376   :  { %v215_v58 = vor.u32 1.1754944e-38, %v214_v52  ;;  %vm213_vm14 = vcmp.eq.f32.partialorder %v212_v55, 8.507059e+37 }
 0x37a   :  { %v1553_v47 = vpop.eup %1552 }
 0x37b   :  { %v204_v48 = vmul.f32 %v1553_v47, %v199_v46  ;;  %vm209_vm11 = vweird.f32 %v1553_v47 }
 0x37c   :  { %vm210_vm13 = vmor %vm208_vm12, %vm209_vm11 }
 0x37d   :  { %v205_v49 = vsub.f32 1.0, %v204_v48 }
 0x37f   :  { %v206_v54 = vmul.f32 %v1553_v47, %v205_v49 }
 0x381   :  { %v202_v56 = vpop.xlane.xlu2 %201  ;;  %v207_v57 = vadd.f32 %v1553_v47, %v206_v54 }
 0x382   :  { %1554 = vrcp.f32 %v202_v56  ;;  %v229_v8 = vand.u32 2147483648, %v202_v56  ;;  %vm223_vm1 = vweird.f32 %v202_v56  ;;  %v227_v9 = vand.u32 2147483647, %v202_v56 }
 0x383   :  { %v211_v60 = vsel %vm210_vm13, %v1553_v47, %v207_v57  ;;  %v1498_v47 = vld [vmem:[%s2015_s5 + $0x8] sm:$0xff]  ;;  %v1497_v57 = vld [vmem:[%s2015_s5] sm:$0xff] }
 0x384   :  { %v216_v61 = vsel %vm213_vm14, %v215_v58, %v211_v60  ;;  %v230_v16 = vor.u32 1.1754944e-38, %v229_v8  ;;  %vm228_vm4 = vcmp.eq.f32.partialorder %v227_v9, 8.507059e+37  ;;  %453 = vmatpush.bf16.msra.mxu0 %v1498_v47 }
 0x385   :  { %v217_v62 = vmul.f32 %v1545_v27, %v216_v61 }
 0x387   :  { %v233_v59 = vpack.c.bf16 %v217_v62, %v217_v62 }
 0x388   :  { %v1555_v63 = vpop.eup %1554  ;;  %454 = vmatpush.bf16.msra.mxu0 %v1497_v57 }
 0x389   :  { %v219_v0 = vmul.f32 %v1555_v63, %v202_v56  ;;  %1371 = vmatmul.msk.bf16.vlgmr.msra.gmra.mxu3 %vm184_vm9, %v233_v59  ;;  %vm224_vm15 = vweird.f32 %v1555_v63 }
 0x38a   :  { %vm225_vm2 = vmor %vm223_vm1, %vm224_vm15 }
 0x38b   :  { %v220_v1 = vsub.f32 1.0, %v219_v0  ;;  %v338_v2 = vpop.xlane.xlu0 %337  ;;  %v431_v0 = vperm.slane %v1732_v53, 1 }
 0x38c   :  { %1556 = vrcp.f32 %v338_v2  ;;  %v353_v12 = vand.u32 2147483648, %v338_v2  ;;  %v351_v14 = vand.u32 2147483647, %v338_v2  ;;  %vm347_vm5 = vweird.f32 %v338_v2 }
 0x38d   :  { %v221_v3 = vmul.f32 %v1555_v63, %v220_v1 }
 0x38e   :  { %v354_v19 = vor.u32 1.1754944e-38, %v353_v12  ;;  %vm352_vm7 = vcmp.eq.f32.partialorder %v351_v14, 8.507059e+37 }
 0x38f   :  { %v222_v5 = vadd.f32 %v1555_v63, %v221_v3 }
 0x391   :  { %v226_v15 = vsel %vm225_vm2, %v1555_v63, %v222_v5 }
 0x392   :  { %v1557_v4 = vpop.eup %1556  ;;  %v231_v20 = vsel %vm228_vm4, %v230_v16, %v226_v15 }
 0x393   :  { %v343_v6 = vmul.f32 %v1557_v4, %v338_v2  ;;  %v341_v7 = vpop.xlane.xlu2 %340  ;;  %vm348_vm3 = vweird.f32 %v1557_v4  ;;  %v232_v29 = vmul.f32 %v1768_v33, %v231_v20 }
 0x394   :  { %1558 = vrcp.f32 %v341_v7  ;;  %vm349_vm6 = vmor %vm347_vm5, %vm348_vm3  ;;  %v368_v38 = vand.u32 2147483648, %v341_v7  ;;  %vm362_vm12 = vweird.f32 %v341_v7 }
 0x395   :  { %v344_v11 = vsub.f32 1.0, %v343_v6  ;;  %v234_v36 = vpack.c.bf16 %v232_v29, %v232_v29 }
 0x396   :  { %v369_v40 = vor.u32 1.1754944e-38, %v368_v38 }
 0x397   :  { %v345_v13 = vmul.f32 %v1557_v4, %v344_v11 }
 0x399   :  { %v346_v17 = vadd.f32 %v1557_v4, %v345_v13 }
 0x39a   :  { %v1559_v18 = vpop.eup %1558 }
 0x39b   :  { %v358_v21 = vmul.f32 %v1559_v18, %v341_v7  ;;  %v375_v22 = vpop.permute.xlu2 %374  ;;  %v350_v23 = vsel %vm349_vm6, %v1557_v4, %v346_v17  ;;  %vm363_vm11 = vweird.f32 %v1559_v18  ;;  %vm600_vm6 = vcmask 523264  }
 0x39c   :  { %v380_v24 = vsel %vm240_vm10, %v375_v22, 0  ;;  %v355_v25 = vsel %vm352_vm7, %v354_v19, %v350_v23  ;;  %vm364_vm13 = vmor %vm362_vm12, %vm363_vm11 }
 0x39d   :  { %v359_v27 = vsub.f32 1.0, %v358_v21  ;;  %389 = vmatpush.bf16.msrb.mxu2 %v380_v24  ;;  %v356_v28 = vmul.f32 %v1772_v39, %v355_v25  ;;  %v366_v39 = vand.u32 2147483647, %v341_v7  ;;  %v1499_v21 = vld [vmem:[%s2016_s6] sm:$0xff] }
 0x39e   :  { %v258_v30 = vpop.permute.xlu0 %257 }
 0x39f   :  { %v360_v31 = vmul.f32 %v1559_v18, %v359_v27  ;;  %v263_v32 = vsel %vm240_vm10, %v258_v30, 0  ;;  %v372_v34 = vpack.c.bf16 %v356_v28, %v356_v28  ;;  %vm367_vm14 = vcmp.eq.f32.partialorder %v366_v39, 8.507059e+37 }
 0x3a0   :  { %272 = vmatpush.bf16.msrb.mxu3 %v263_v32  ;;  %v507_v39 = vperm.slane %v1732_v53, 2 }
 0x3a1   :  { %1375 = vmatmul.msk.bf16.vlgmr.msrb.gmra.mxu2 %vm184_vm9, %v372_v34  ;;  %v361_v37 = vadd.f32 %v1559_v18, %v360_v31 }
 0x3a3   :  { %1372 = vmatmul.msk.bf16.vlgmr.msrb.gmra.mxu3 %vm184_vm9, %v234_v36  ;;  %v365_v33 = vsel %vm364_vm13, %v1559_v18, %v361_v37 }
 0x3a4   :  { %410 = vmatpush.bf16.msra.mxu3 %v401_v35  ;;  %v370_v41 = vsel %vm367_vm14, %v369_v40, %v365_v33 }
 0x3a5   :  { %v371_v43 = vmul.f32 %v1776_v42, %v370_v41 }
 0x3a7   :  { %v373_v44 = vpack.c.bf16 %v371_v43, %v371_v43  ;;  %v510_v43 = vperm.slane %v1732_v53, 3 }
 0x3b3   :  { %1376 = vmatmul.msk.bf16.vlgmr.msra.gmra.mxu3 %vm184_vm9, %v373_v44 }
 0x40c   :  { %v253_v45 = vpop.f32.mrf.mxu3 }
 0x414   :  { %v255_v46 = vpop.f32.mrf.mxu3 }
 0x424   :  { %v391_v48 = vpop.f32.mrf.mxu2 }
 0x426   :  { %v274_v49 = vpop.f32.mrf.mxu3 }
 0x42c   :  { %v393_v52 = vpop.f32.mrf.mxu2 }
 0x42d   :  { %v1504_v52 = vld [vmem:[%s2017_s7 + $0x18] sm:$0xff] }
 0x42e   :  { %v276_v54 = vpop.f32.mrf.mxu3  ;;  %608 = vmatpush.bf16.msra.mxu2 %v1504_v52 }
 0x42f   :  { %v1503_v54 = vld [vmem:[%s2017_s7 + $0x10] sm:$0xff] }
 0x432   :  { %609 = vmatpush.bf16.msra.mxu2 %v1503_v54 }
 0x436   :  { %v412_v55 = vpop.f32.mrf.mxu3 }
 0x437   :  { %v1526_v56 = vpack.i.bf16 %v412_v55, %v391_v48  ;;  %v1502_v55 = vld [vmem:[%s2017_s7 + $0x8] sm:$0xff] }
 0x438   :  { %610 = vmatpush.bf16.msra.mxu2 %v1502_v55 }
 0x439   :  { %1527 = vrot.lane.b32.xlu0 %v1526_v56, %s1639_s11  ;;  %v518_v56 = vperm.slane %v1732_v53, 4 }
 0x43e   :  { %v414_v42 = vpop.f32.mrf.mxu3 }
 0x43f   :  { %v1501_v42 = vld [vmem:[%s2017_s7] sm:$0xff] }
 0x440   :  { %611 = vmatpush.bf16.msra.mxu2 %v1501_v42 }
 0x4ab   :  { %v1528_v58 = vpop.permute.xlu0 %1527 }
 0x4ac   :  { %v1530_v60 = vunpack.i.h.bf16 %v1528_v58  ;;  %v1529_v61 = vunpack.i.l.bf16 %v1528_v58 }
 0x4ae   :  { %v425_v62 = vsel %vm140_vm8, %v274_v49, %v1530_v60  ;;  %v424_v59 = vsel %vm140_vm8, %v253_v45, %v1529_v61 }
 0x4af   :  { %v426_v63 = vpack.c.bf16 %v425_v62, %v424_v59 }
 0x4b1   :  { %1385 = vmatmul.msk.bf16.vlgmr.msra.gmra.mxu0 %vm39_vm0, %v426_v63 }
 0x52e   :  { %v456_v1 = vpop.f32.mrf.mxu0 }
 0x52f   :  { %v457_v2 = vadd.f32 %v456_v1, %v431_v0 }
 0x531   :  { %v461_v3 = vadd.f32 %v457_v2, %v1722_v50 }
 0x533   :  { %v463_v4 = vsel %vm39_vm0, %v461_v3, 0.0 }
 0x534   :  { %464 = vadd.xlane.f32.xlu1 %v463_v4 }
 0x536   :  { %v458_v5 = vpop.f32.mrf.mxu0 }
 0x537   :  { %v459_v6 = vadd.f32 %v458_v5, %v431_v0 }
 0x539   :  { %v462_v7 = vadd.f32 %v459_v6, %v1724_v51  ;;  %v1500_v51 = vld [vmem:[%s2016_s6 + $0x8] sm:$0xff] }
 0x53a   :  { %540 = vmatpush.bf16.msra.mxu1 %v1500_v51 }
 0x53b   :  { %v466_v8 = vsel %vm39_vm0, %v462_v7, 0.0 }
 0x53c   :  { %467 = vadd.xlane.f32.xlu2 %v466_v8 }
 0x53e   :  { %541 = vmatpush.bf16.msra.mxu1 %v1499_v21 }
 0x5a7   :  { %v465_v9 = vpop.xlane.xlu1 %464 }
 0x5a8   :  { %v469_v11 = vmul.f32 %v465_v9, %v1705_v10 }
 0x5aa   :  { %v471_v12 = vsub.f32 %v461_v3, %v469_v11 }
 0x5ac   :  { %v473_v13 = vmul.f32 %v471_v12, %v471_v12 }
 0x5ae   :  { %v475_v14 = vsel %vm39_vm0, %v473_v13, 0.0 }
 0x5af   :  { %v468_v15 = vpop.xlane.xlu2 %467  ;;  %476 = vadd.xlane.f32.xlu0 %v475_v14 }
 0x5b0   :  { %v470_v50 = vmul.f32 %v468_v15, %v1705_v10 }
 0x5b2   :  { %v472_v16 = vsub.f32 %v462_v7, %v470_v50 }
 0x5b4   :  { %v474_v17 = vmul.f32 %v472_v16, %v472_v16 }
 0x5b6   :  { %v478_v18 = vsel %vm39_vm0, %v474_v17, 0.0 }
 0x5b7   :  { %479 = vadd.xlane.f32.xlu1 %v478_v18 }
 0x622   :  { %v477_v19 = vpop.xlane.xlu0 %476 }
 0x623   :  { %v481_v20 = vmul.f32 %v477_v19, %v1705_v10 }
 0x625   :  { %v483_v22 = vadd.f32 1e-12, %v481_v20 }
 0x627   :  { %1560 = vrsqrt.f32 %v483_v22  ;;  %vm491_vm1 = vweird.f32 %v483_v22 }
 0x62a   :  { %v480_v23 = vpop.xlane.xlu1 %479 }
 0x62b   :  { %v482_v24 = vmul.f32 %v480_v23, %v1705_v10 }
 0x62d   :  { %v1561_v25 = vpop.eup %1560  ;;  %v484_v26 = vadd.f32 1e-12, %v482_v24 }
 0x62e   :  { %v486_v27 = vmul.f32 %v1561_v25, %v483_v22  ;;  %vm492_vm15 = vweird.f32 %v1561_v25 }
 0x62f   :  { %1562 = vrsqrt.f32 %v484_v26  ;;  %vm493_vm2 = vmor %vm491_vm1, %vm492_vm15  ;;  %vm501_vm4 = vweird.f32 %v484_v26 }
 0x630   :  { %v487_v28 = vmul.f32 %v1561_v25, %v486_v27 }
 0x632   :  { %v488_v29 = vmul.f32 0.5, %v487_v28 }
 0x634   :  { %v489_v30 = vsub.f32 1.5, %v488_v29 }
 0x635   :  { %v1563_v31 = vpop.eup %1562 }
 0x636   :  { %v490_v32 = vmul.f32 %v1561_v25, %v489_v30  ;;  %v496_v34 = vmul.f32 %v1563_v31, %v484_v26  ;;  %vm502_vm3 = vweird.f32 %v1563_v31 }
 0x637   :  { %vm503_vm5 = vmor %vm501_vm4, %vm502_vm3 }
 0x638   :  { %v497_v35 = vmul.f32 %v1563_v31, %v496_v34  ;;  %v494_v36 = vsel %vm493_vm2, %v1561_v25, %v490_v32 }
 0x639   :  { %v505_v33 = vmul.f32 %v494_v36, %v471_v12 }
 0x63a   :  { %v498_v37 = vmul.f32 0.5, %v497_v35  ;;  %v1506_v35 = vld [vmem:[%s2014_s4 + $0x18] sm:$0xff] }
 0x63b   :  { %v508_v44 = vmul.f32 %v507_v39, %v505_v33  ;;  %700 = vmatpush.bf16.msrb.mxu3 %v1506_v35 }
 0x63c   :  { %v499_v38 = vsub.f32 1.5, %v498_v37 }
 0x63d   :  { %v511_v47 = vadd.f32 %v510_v43, %v508_v44 }
 0x63e   :  { %v500_v40 = vmul.f32 %v1563_v31, %v499_v38  ;;  %v1505_v38 = vld [vmem:[%s2014_s4 + $0x10] sm:$0xff] }
 0x63f   :  { %701 = vmatpush.bf16.msrb.mxu3 %v1505_v38 }
 0x640   :  { %v504_v41 = vsel %vm503_vm5, %v1563_v31, %v500_v40 }
 0x641   :  { %v506_v45 = vmul.f32 %v504_v41, %v472_v16  ;;  %v575_v16 = vperm.slane %v1732_v53, 5 }
 0x643   :  { %v509_v46 = vmul.f32 %v507_v39, %v506_v45 }
 0x645   :  { %v512_v48 = vadd.f32 %v510_v43, %v509_v46 }
 0x647   :  { %v513_v49 = vpack.c.bf16 %v512_v48, %v511_v47 }
 0x649   :  { %1394 = vmatmul.msk.bf16.vlgmr.msra.gmra.mxu1 %vm39_vm0, %v513_v49 }
 0x6c6   :  { %v543_v57 = vpop.f32.mrf.mxu1 }
 0x6c7   :  { %v544_v58 = vadd.f32 %v543_v57, %v518_v56  ;;  %v664_v57 = vperm.slane %v1732_v53, 6 }
 0x6c9   :  { %v548_v60 = vmul.f32 %v544_v58, %v544_v58 }
 0x6cb   :  { %v550_v61 = vmul.f32 %v548_v60, %v544_v58 }
 0x6cd   :  { %v552_v62 = vmul.f32 0.044715, %v550_v61 }
 0x6ce   :  { %v545_v59 = vpop.f32.mrf.mxu1 }
 0x6cf   :  { %v554_v63 = vadd.f32 %v552_v62, %v544_v58  ;;  %v546_v0 = vadd.f32 %v545_v59, %v518_v56  ;;  %v667_v62 = vperm.slane %v1732_v53, 7 }
 0x6d1   :  { %v556_v1 = vmul.f32 0.7978846, %v554_v63  ;;  %v549_v2 = vmul.f32 %v546_v0, %v546_v0 }
 0x6d3   :  { %v551_v3 = vmul.f32 %v549_v2, %v546_v0  ;;  %1564 = vtanh.f32 %v556_v1 }
 0x6d5   :  { %v553_v4 = vmul.f32 0.044715, %v551_v3 }
 0x6d7   :  { %v555_v5 = vadd.f32 %v553_v4, %v546_v0  ;;  %v1866_v4 = vld [vmem:[%s2013_s3 + $0x8] sm:$0xff]  ;;  %s1347_s3 = sshll.u32 %s2019_s9, 4  ;;  %s1348_s3 = int_to_ptr.hbm [resolvable:$true] %s1347_s3 }
 0x6d9   :  { %v557_v6 = vmul.f32 0.7978846, %v555_v5  ;;  %v1565_v7 = vpop.eup %1564  ;;  %v678_v5 = vperm.slane %v1866_v4, 0 }
 0x6da   :  { %v560_v8 = vadd.f32 1.0, %v1565_v7 }
 0x6db   :  { %1566 = vtanh.f32 %v557_v6 }
 0x6dc   :  { %v562_v11 = vmul.f32 0.5, %v560_v8 }
 0x6de   :  { %v564_v14 = vmul.f32 %v562_v11, %v544_v58 }
 0x6e1   :  { %v1567_v9 = vpop.eup %1566 }
 0x6e2   :  { %v561_v12 = vadd.f32 1.0, %v1567_v9 }
 0x6e4   :  { %v563_v13 = vmul.f32 0.5, %v561_v12 }
 0x6e6   :  { %v565_v15 = vmul.f32 %v563_v13, %v546_v0 }
 0x6e8   :  { %v566_v50 = vpack.c.bf16 %v565_v15, %v564_v14 }
 0x6ea   :  { %1411 = vmatmul.msk.bf16.vlgmr.msra.gmra.mxu2 %vm600_vm6, %v566_v50 }
 0x76d   :  { %v613_v17 = vpop.f32.mrf.mxu2 }
 0x76e   :  { %v614_v18 = vadd.f32 %v613_v17, %v575_v16 }
 0x770   :  { %v618_v51 = vadd.f32 %v614_v18, %v511_v47 }
 0x772   :  { %v620_v19 = vsel %vm39_vm0, %v618_v51, 0.0 }
 0x773   :  { %621 = vadd.xlane.f32.xlu2 %v620_v19 }
 0x775   :  { %v615_v20 = vpop.f32.mrf.mxu2 }
 0x776   :  { %v616_v21 = vadd.f32 %v615_v20, %v575_v16 }
 0x778   :  { %v619_v22 = vadd.f32 %v616_v21, %v512_v48 }
 0x77a   :  { %v623_v23 = vsel %vm39_vm0, %v619_v22, 0.0 }
 0x77b   :  { %624 = vadd.xlane.f32.xlu0 %v623_v23 }
 0x7e6   :  { %v622_v24 = vpop.xlane.xlu2 %621 }
 0x7e7   :  { %v626_v25 = vmul.f32 %v622_v24, %v1705_v10 }
 0x7e9   :  { %v628_v26 = vsub.f32 %v618_v51, %v626_v25 }
 0x7eb   :  { %v630_v27 = vmul.f32 %v628_v26, %v628_v26 }
 0x7ed   :  { %v632_v28 = vsel %vm39_vm0, %v630_v27, 0.0 }
 0x7ee   :  { %v625_v29 = vpop.xlane.xlu0 %624  ;;  %633 = vadd.xlane.f32.xlu1 %v632_v28 }
 0x7ef   :  { %v627_v30 = vmul.f32 %v625_v29, %v1705_v10 }
 0x7f1   :  { %v629_v31 = vsub.f32 %v619_v22, %v627_v30 }
 0x7f3   :  { %v631_v32 = vmul.f32 %v629_v31, %v629_v31 }
 0x7f5   :  { %v635_v34 = vsel %vm39_vm0, %v631_v32, 0.0 }
 0x7f6   :  { %636 = vadd.xlane.f32.xlu2 %v635_v34 }
 0x861   :  { %v634_v36 = vpop.xlane.xlu1 %633 }
 0x862   :  { %v638_v37 = vmul.f32 %v634_v36, %v1705_v10 }
 0x864   :  { %v640_v39 = vadd.f32 1e-12, %v638_v37 }
 0x866   :  { %1568 = vrsqrt.f32 %v640_v39  ;;  %vm648_vm11 = vweird.f32 %v640_v39 }
 0x869   :  { %v637_v33 = vpop.xlane.xlu2 %636 }
 0x86a   :  { %v639_v40 = vmul.f32 %v637_v33, %v1705_v10 }
 0x86c   :  { %v1569_v41 = vpop.eup %1568  ;;  %v641_v43 = vadd.f32 1e-12, %v639_v40 }
 0x86d   :  { %v643_v44 = vmul.f32 %v1569_v41, %v640_v39  ;;  %vm649_vm7 = vweird.f32 %v1569_v41 }
 0x86e   :  { %1570 = vrsqrt.f32 %v641_v43  ;;  %vm650_vm12 = vmor %vm648_vm11, %vm649_vm7  ;;  %vm658_vm14 = vweird.f32 %v641_v43 }
 0x86f   :  { %v644_v45 = vmul.f32 %v1569_v41, %v643_v44 }
 0x871   :  { %v645_v46 = vmul.f32 0.5, %v644_v45 }
 0x873   :  { %v646_v47 = vsub.f32 1.5, %v645_v46 }
 0x874   :  { %v1571_v48 = vpop.eup %1570 }
 0x875   :  { %v647_v49 = vmul.f32 %v1569_v41, %v646_v47  ;;  %v653_v52 = vmul.f32 %v1571_v48, %v641_v43  ;;  %vm659_vm13 = vweird.f32 %v1571_v48 }
 0x876   :  { %vm660_vm15 = vmor %vm658_vm14, %vm659_vm13 }
 0x877   :  { %v654_v54 = vmul.f32 %v1571_v48, %v653_v52  ;;  %v651_v55 = vsel %vm650_vm12, %v1569_v41, %v647_v49 }
 0x878   :  { %v662_v58 = vmul.f32 %v651_v55, %v628_v26 }
 0x879   :  { %v655_v56 = vmul.f32 0.5, %v654_v54 }
 0x87a   :  { %v665_v59 = vmul.f32 %v664_v57, %v662_v58 }
 0x87b   :  { %v656_v42 = vsub.f32 1.5, %v655_v56 }
 0x87c   :  { %v1856_v1 = vadd.f32 %v667_v62, %v665_v59 }
 0x87d   :  { %v657_v60 = vmul.f32 %v1571_v48, %v656_v42 }
 0x87f   :  { %v661_v61 = vsel %vm660_vm15, %v1571_v48, %v657_v60 }
 0x880   :  { %v663_v63 = vmul.f32 %v661_v61, %v629_v31 }
 0x882   :  { %v666_v0 = vmul.f32 %v664_v57, %v663_v63 }
 0x884   :  { %v1858_v2 = vadd.f32 %v667_v62, %v666_v0 }
 0x886   :  { %v672_v3 = vpack.c.bf16 %v1858_v2, %v1856_v1 }
 0x888   :  { %1425 = vmatmul.msk.bf16.vlgmr.msrb.gmra.mxu3 %vm39_vm0, %v672_v3 }
 0x90b   :  { %v703_v53 = vpop.f32.mrf.mxu3 }
 0x90c   :  { %v704_v6 = vadd.f32 %v703_v53, %v678_v5 }
 0x90e   :  { %v708_v7 = vpack.c.bf16 %v704_v6, %v704_v6 }
 0x910   :  { %v711_v8 = vunpack.c.l.b16 %v708_v7 }
 0x912   :  { %v1869_v9 = vpack.c.b16 %v711_v8, %v711_v8 }
 0x913   :  { %v705_v11 = vpop.f32.mrf.mxu3 }
 0x914   :  { %v706_v12 = vadd.f32 %v705_v11, %v678_v5  ;;  %852 = vrot.lane.b32.xlu2 %v1869_v9, %s1634_s24  ;;  %713 = vrot.lane.b32.xlu0 %v1869_v9, %s1635_s25 }
 0x916   :  { %v709_v13 = vpack.c.bf16 %v706_v12, %v706_v12 }
 0x918   :  { %v735_v14 = vunpack.c.l.b16 %v709_v13 }
 0x91a   :  { %v1875_v15 = vpack.c.b16 %v735_v14, %v735_v14 }
 0x91c   :  { %737 = vrot.lane.b32.xlu1 %v1875_v15, %s1635_s25  ;;  %875 = vrot.lane.b32.xlu0 %v1875_v15, %s1634_s24 }
 0x924   :  { %850 = vrot.lane.b32.xlu1 %v1869_v9, %s1636_s26  ;;  %873 = vrot.lane.b32.xlu0 %v1875_v15, %s1636_s26 }
 0x96e   :  { %v853_v50 = vpop.permute.xlu2 %852 }
 0x96f   :  { %v858_v18 = vsel %vm140_vm8, %v853_v50, 0 }
 0x986   :  { %v714_v16 = vpop.permute.xlu0 %713 }
 0x987   :  { %v719_v17 = vsel %vm140_vm8, %v714_v16, 0 }
 0x988   :  { %728 = vmatpush.bf16.xpose.msrb.mxu0 %v719_v17 }
 0x98e   :  { %v738_v51 = vpop.permute.xlu1 %737  ;;  %v876_v19 = vpop.permute.xlu0 %875 }
 0x98f   :  { %v743_v20 = vsel %vm140_vm8, %v738_v51, 0  ;;  %v881_v21 = vsel %vm140_vm8, %v876_v19, 0  ;;  %1426 = vmatmul.msk.bf16.vlgmr.msrb.gmra.mxu0 %vm140_vm8, %v708_v7 }
 0x990   :  { %867 = vmatpush.bf16.xpose.msra.mxu0 %v858_v18  ;;  %752 = vmatpush.bf16.xpose.msrb.mxu1 %v743_v20 }
 0x996   :  { %v851_v22 = vpop.permute.xlu1 %850  ;;  %v874_v23 = vpop.permute.xlu0 %873 }
 0x997   :  { %1427 = vmatmul.msk.bf16.vlgmr.msrb.gmra.mxu1 %vm140_vm8, %v709_v13 }
 0x998   :  { %890 = vmatpush.bf16.xpose.msra.mxu1 %v881_v21 }
 0x99f   :  { %1430 = vmatmul.msk.bf16.vlgmr.msra.gmra.mxu0 %vm140_vm8, %v851_v22 }
 0x9a7   :  { %1431 = vmatmul.msk.bf16.vlgmr.msra.gmra.mxu1 %vm140_vm8, %v874_v23 }
 0xa0c   :  { %v730_v24 = vpop.f32.mrf.mxu0 }
 0xa0d   :  { %v758_v25 = vsel %vm184_vm9, %v730_v24, -inf }
 0xa0e   :  { %759 = vmax.xlane.f32.xlu2 %v758_v25 }
 0xa14   :  { %v732_v26 = vpop.f32.mrf.mxu0  ;;  %v754_v27 = vpop.f32.mrf.mxu1 }
 0xa15   :  { %v761_v28 = vsel %vm184_vm9, %v754_v27, -inf }
 0xa16   :  { %762 = vmax.xlane.f32.xlu1 %v761_v28 }
 0xa1c   :  { %v756_v29 = vpop.f32.mrf.mxu1  ;;  %v869_v30 = vpop.f32.mrf.mxu0 }
 0xa1d   :  { %v896_v31 = vsel %vm184_vm9, %v869_v30, -inf }
 0xa1e   :  { %897 = vmax.xlane.f32.xlu0 %v896_v31 }
 0xa24   :  { %v871_v32 = vpop.f32.mrf.mxu0  ;;  %v892_v34 = vpop.f32.mrf.mxu1 }
 0xa25   :  { %v899_v35 = vsel %vm184_vm9, %v892_v34, -inf }
 0xa26   :  { %900 = vmax.xlane.f32.xlu2 %v899_v35 }
 0xa2c   :  { %v894_v36 = vpop.f32.mrf.mxu1 }
 0xa32   :  { %808 = vrot.lane.b32.xlu0 %v1869_v9, %s1637_s27 }
 0xa81   :  { %v760_v37 = vpop.xlane.xlu2 %759 }
 0xa82   :  { %v764_v38 = vsub.f32 %v730_v24, %v760_v37 }
 0xa84   :  { %v766_v39 = vmul.f32 1.442695, %v764_v38 }
 0xa86   :  { %1572 = vpow2.f32 %v766_v39 }
 0xa89   :  { %v763_v33 = vpop.xlane.xlu1 %762 }
 0xa8a   :  { %v765_v40 = vsub.f32 %v754_v27, %v763_v33 }
 0xa8c   :  { %v1573_v41 = vpop.eup %1572  ;;  %v768_v43 = vmul.f32 1.442695, %v765_v40 }
 0xa8d   :  { %v770_v44 = vsel %vm184_vm9, %v1573_v41, 0.0 }
 0xa8e   :  { %1574 = vpow2.f32 %v768_v43  ;;  %771 = vadd.xlane.f32.xlu1 %v770_v44 }
 0xa91   :  { %v898_v45 = vpop.xlane.xlu0 %897 }
 0xa92   :  { %v902_v46 = vsub.f32 %v869_v30, %v898_v45 }
 0xa94   :  { %v1900_v47 = vpop.eup %1574  ;;  %v904_v48 = vmul.f32 1.442695, %v902_v46 }
 0xa95   :  { %v773_v49 = vsel %vm184_vm9, %v1900_v47, 0.0 }
 0xa96   :  { %1576 = vpow2.f32 %v904_v48  ;;  %774 = vadd.xlane.f32.xlu0 %v773_v49 }
 0xa99   :  { %v901_v52 = vpop.xlane.xlu2 %900 }
 0xa9a   :  { %v903_v54 = vsub.f32 %v892_v34, %v901_v52 }
 0xa9c   :  { %v1904_v55 = vpop.eup %1576  ;;  %v906_v56 = vmul.f32 1.442695, %v903_v54 }
 0xa9d   :  { %v908_v42 = vsel %vm184_vm9, %v1904_v55, 0.0 }
 0xa9e   :  { %1578 = vpow2.f32 %v906_v56  ;;  %909 = vadd.xlane.f32.xlu2 %v908_v42 }
 0xaa4   :  { %v1908_v57 = vpop.eup %1578  ;;  %v809_v58 = vpop.permute.xlu0 %808 }
 0xaa5   :  { %v814_v60 = vsel %vm240_vm10, %v809_v58, 0  ;;  %v911_v61 = vsel %vm184_vm9, %v1908_v57, 0.0 }
 0xaa6   :  { %912 = vadd.xlane.f32.xlu1 %v911_v61  ;;  %823 = vmatpush.bf16.msrb.mxu2 %v814_v60 }
 0xaaa   :  { %967 = vrot.lane.b32.xlu0 %v1875_v15, %s1638_s28 }
 0xab6   :  { %829 = vrot.lane.b32.xlu2 %v1875_v15, %s1637_s27 }
 0xabf   :  { %946 = vrot.lane.b32.xlu1 %v1869_v9, %s1638_s28 }
 0xb01   :  { %v772_v62 = vpop.xlane.xlu1 %771 }
 0xb02   :  { %1580 = vrcp.f32 %v772_v62  ;;  %v787_v5 = vand.u32 2147483648, %v772_v62  ;;  %v785_v6 = vand.u32 2147483647, %v772_v62  ;;  %vm781_vm2 = vweird.f32 %v772_v62 }
 0xb04   :  { %v788_v11 = vor.u32 1.1754944e-38, %v787_v5  ;;  %vm786_vm4 = vcmp.eq.f32.partialorder %v785_v6, 8.507059e+37 }
 0xb08   :  { %v1581_v59 = vpop.eup %1580 }
 0xb09   :  { %v777_v63 = vmul.f32 %v1581_v59, %v772_v62  ;;  %v775_v0 = vpop.xlane.xlu0 %774  ;;  %vm782_vm1 = vweird.f32 %v1581_v59 }
 0xb0a   :  { %1582 = vrcp.f32 %v775_v0  ;;  %vm783_vm3 = vmor %vm781_vm2, %vm782_vm1  ;;  %v802_v16 = vand.u32 2147483648, %v775_v0  ;;  %v800_v18 = vand.u32 2147483647, %v775_v0  ;;  %vm796_vm7 = vweird.f32 %v775_v0 }
 0xb0b   :  { %v778_v3 = vsub.f32 1.0, %v777_v63 }
 0xb0c   :  { %v803_v21 = vor.u32 1.1754944e-38, %v802_v16  ;;  %vm801_vm12 = vcmp.eq.f32.partialorder %v800_v18, 8.507059e+37 }
 0xb0d   :  { %v779_v53 = vmul.f32 %v1581_v59, %v778_v3 }
 0xb0f   :  { %v780_v7 = vadd.f32 %v1581_v59, %v779_v53 }
 0xb10   :  { %v1583_v8 = vpop.eup %1582 }
 0xb11   :  { %v784_v12 = vsel %vm783_vm3, %v1581_v59, %v780_v7  ;;  %v792_v13 = vmul.f32 %v1583_v8, %v775_v0  ;;  %v910_v9 = vpop.xlane.xlu2 %909  ;;  %vm797_vm5 = vweird.f32 %v1583_v8  ;;  %v1508_v59 = vld [vmem:[%s2015_s5 + $0x18] sm:$0xff]  ;;  %v1507_v7 = vld [vmem:[%s2015_s5 + $0x10] sm:$0xff] }
 0xb12   :  { %v789_v14 = vsel %vm786_vm4, %v788_v11, %v784_v12  ;;  %1584 = vrcp.f32 %v910_v9  ;;  %vm798_vm11 = vmor %vm796_vm7, %vm797_vm5  ;;  %vm919_vm1 = vweird.f32 %v910_v9  ;;  %v923_v44 = vand.u32 2147483647, %v910_v9  ;;  %1026 = vmatpush.bf16.msrb.mxu0 %v1508_v59 }
 0xb13   :  { %v790_v15 = vmul.f32 %v1573_v41, %v789_v14  ;;  %v793_v50 = vsub.f32 1.0, %v792_v13  ;;  %v925_v41 = vand.u32 2147483648, %v910_v9 }
 0xb14   :  { %vm924_vm5 = vcmp.eq.f32.partialorder %v923_v44, 8.507059e+37 }
 0xb15   :  { %v794_v17 = vmul.f32 %v1583_v8, %v793_v50  ;;  %v806_v51 = vpack.c.bf16 %v790_v15, %v790_v15  ;;  %v926_v49 = vor.u32 1.1754944e-38, %v925_v41  ;;  %v1004_v15 = vperm.slane %v1866_v4, 1 }
 0xb16   :  { %1027 = vmatpush.bf16.msrb.mxu0 %v1507_v7  ;;  %v1511_v7 = vld [vmem:[%s2017_s7 + $0x20] sm:$0xff] }
 0xb17   :  { %v795_v19 = vadd.f32 %v1583_v8, %v794_v17  ;;  %1428 = vmatmul.msk.bf16.vlgmr.msrb.gmra.mxu2 %vm184_vm9, %v806_v51 }
 0xb18   :  { %v1585_v20 = vpop.eup %1584 }
 0xb19   :  { %v799_v22 = vsel %vm798_vm11, %v1583_v8, %v795_v19  ;;  %v913_v23 = vpop.xlane.xlu1 %912  ;;  %v830_v24 = vpop.permute.xlu2 %829  ;;  %v915_v26 = vmul.f32 %v1585_v20, %v910_v9  ;;  %vm920_vm14 = vweird.f32 %v1585_v20 }
 0xb1a   :  { %v804_v25 = vsel %vm801_vm12, %v803_v21, %v799_v22  ;;  %1586 = vrcp.f32 %v913_v23  ;;  %v835_v28 = vsel %vm240_vm10, %v830_v24, 0  ;;  %v940_v38 = vand.u32 2147483648, %v913_v23  ;;  %vm921_vm3 = vmor %vm919_vm1, %vm920_vm14 }
 0xb1b   :  { %v805_v27 = vmul.f32 %v1900_v47, %v804_v25  ;;  %844 = vmatpush.bf16.msra.mxu3 %v835_v28  ;;  %v916_v32 = vsub.f32 1.0, %v915_v26  ;;  %v938_v33 = vand.u32 2147483647, %v913_v23  ;;  %vm934_vm15 = vweird.f32 %v913_v23 }
 0xb1c   :  { %v968_v29 = vpop.permute.xlu0 %967  ;;  %v941_v45 = vor.u32 1.1754944e-38, %v940_v38 }
 0xb1d   :  { %v973_v30 = vsel %vm240_vm10, %v968_v29, 0  ;;  %v807_v31 = vpack.c.bf16 %v805_v27, %v805_v27  ;;  %v917_v36 = vmul.f32 %v1585_v20, %v916_v32  ;;  %vm939_vm4 = vcmp.eq.f32.partialorder %v938_v33, 8.507059e+37 }
 0xb1f   :  { %982 = vmatpush.bf16.msrb.mxu3 %v973_v30  ;;  %v918_v40 = vadd.f32 %v1585_v20, %v917_v36 }
 0xb20   :  { %1429 = vmatmul.msk.bf16.vlgmr.msra.gmra.mxu3 %vm184_vm9, %v807_v31  ;;  %v1587_v34 = vpop.eup %1586 }
 0xb21   :  { %v930_v35 = vmul.f32 %v1587_v34, %v913_v23  ;;  %vm935_vm13 = vweird.f32 %v1587_v34  ;;  %v922_v47 = vsel %vm921_vm3, %v1585_v20, %v918_v40  ;;  %vm1256_vm3 = vcmask 1041409  }
 0xb22   :  { %vm936_vm2 = vmor %vm934_vm15, %vm935_vm13  ;;  %v927_v54 = vsel %vm924_vm5, %v926_v49, %v922_v47  ;;  %vm1338_vm5 = vcmask 1024  }
 0xb23   :  { %v931_v37 = vsub.f32 1.0, %v930_v35  ;;  %v928_v42 = vmul.f32 %v1904_v55, %v927_v54  ;;  %v1509_v35 = vld [vmem:[%s2016_s6 + $0x10] sm:$0xff]  ;;  %v1080_v54 = vperm.slane %v1866_v4, 2 }
 0xb25   :  { %v932_v39 = vmul.f32 %v1587_v34, %v931_v37  ;;  %v944_v61 = vpack.c.bf16 %v928_v42, %v928_v42 }
 0xb27   :  { %v933_v43 = vadd.f32 %v1587_v34, %v932_v39 }
 0xb29   :  { %v937_v46 = vsel %vm936_vm2, %v1587_v34, %v933_v43 }
 0xb2a   :  { %v942_v48 = vsel %vm939_vm4, %v941_v45, %v937_v46  ;;  %vm1312_vm4 = vcmask 9216  }
 0xb2b   :  { %v943_v52 = vmul.f32 %v1908_v57, %v942_v48 }
 0xb2d   :  { %v945_v56 = vpack.c.bf16 %v943_v52, %v943_v52 }
 0xb30   :  { %1433 = vmatmul.msk.bf16.vlgmr.msrb.gmra.mxu3 %vm184_vm9, %v945_v56 }
 0xb31   :  { %v947_v58 = vpop.permute.xlu1 %946 }
 0xb32   :  { %v952_v60 = vsel %vm240_vm10, %v947_v58, 0 }
 0xb33   :  { %961 = vmatpush.bf16.msra.mxu2 %v952_v60  ;;  %v1083_v60 = vperm.slane %v1866_v4, 3 }
 0xb36   :  { %1432 = vmatmul.msk.bf16.vlgmr.msra.gmra.mxu2 %vm184_vm9, %v944_v61 }
 0xb9a   :  { %v825_v62 = vpop.f32.mrf.mxu2 }
 0xba2   :  { %v827_v57 = vpop.f32.mrf.mxu2 }
 0xba3   :  { %v846_v63 = vpop.f32.mrf.mxu3 }
 0xbab   :  { %v848_v0 = vpop.f32.mrf.mxu3 }
 0xbb3   :  { %v984_v3 = vpop.f32.mrf.mxu3 }
 0xbb9   :  { %v963_v5 = vpop.f32.mrf.mxu2 }
 0xbba   :  { %v1531_v53 = vpack.i.bf16 %v984_v3, %v963_v5  ;;  %v1514_v3 = vld [vmem:[%s2017_s7 + $0x38] sm:$0xff]  ;;  %v1513_v5 = vld [vmem:[%s2017_s7 + $0x30] sm:$0xff] }
 0xbbb   :  { %v986_v55 = vpop.f32.mrf.mxu3  ;;  %1182 = vmatpush.bf16.msrb.mxu2 %v1514_v3 }
 0xbbc   :  { %1532 = vrot.lane.b32.xlu2 %v1531_v53, %s1639_s11  ;;  %v1512_v53 = vld [vmem:[%s2017_s7 + $0x28] sm:$0xff]  ;;  %v1092_v55 = vperm.slane %v1866_v4, 4 }
 0xbbf   :  { %1183 = vmatpush.bf16.msrb.mxu2 %v1513_v5 }
 0xbc1   :  { %v965_v6 = vpop.f32.mrf.mxu2 }
 0xbc3   :  { %1184 = vmatpush.bf16.msrb.mxu2 %v1512_v53 }
 0xbc7   :  { %1185 = vmatpush.bf16.msrb.mxu2 %v1511_v7 }
 0xc16   :  { %v1533_v8 = vpop.permute.xlu2 %1532 }
 0xc17   :  { %v1535_v11 = vunpack.i.h.bf16 %v1533_v8  ;;  %v1534_v12 = vunpack.i.l.bf16 %v1533_v8 }
 0xc19   :  { %v997_v13 = vsel %vm140_vm8, %v846_v63, %v1535_v11  ;;  %v996_v9 = vsel %vm140_vm8, %v825_v62, %v1534_v12 }
 0xc1a   :  { %v998_v14 = vpack.c.bf16 %v997_v13, %v996_v9 }
 0xc1c   :  { %1446 = vmatmul.msk.bf16.vlgmr.msrb.gmra.mxu0 %vm39_vm0, %v998_v14 }
 0xc99   :  { %v1029_v50 = vpop.f32.mrf.mxu0 }
 0xc9a   :  { %v1030_v16 = vadd.f32 %v1029_v50, %v1004_v15 }
 0xc9c   :  { %v1034_v17 = vadd.f32 %v1030_v16, %v1856_v1 }
 0xc9e   :  { %v1036_v18 = vsel %vm39_vm0, %v1034_v17, 0.0 }
 0xc9f   :  { %1037 = vadd.xlane.f32.xlu0 %v1036_v18 }
 0xca1   :  { %v1031_v51 = vpop.f32.mrf.mxu0 }
 0xca2   :  { %v1032_v19 = vadd.f32 %v1031_v51, %v1004_v15 }
 0xca4   :  { %v1035_v20 = vadd.f32 %v1032_v19, %v1858_v2  ;;  %v1510_v2 = vld [vmem:[%s2016_s6 + $0x18] sm:$0xff] }
 0xca5   :  { %1114 = vmatpush.bf16.msrb.mxu1 %v1510_v2 }
 0xca6   :  { %v1039_v21 = vsel %vm39_vm0, %v1035_v20, 0.0 }
 0xca7   :  { %1040 = vadd.xlane.f32.xlu1 %v1039_v21 }
 0xca9   :  { %1115 = vmatpush.bf16.msrb.mxu1 %v1509_v35 }
 0xd12   :  { %v1038_v22 = vpop.xlane.xlu0 %1037 }
 0xd13   :  { %v1042_v23 = vmul.f32 %v1038_v22, %v1705_v10 }
 0xd15   :  { %v1044_v24 = vsub.f32 %v1034_v17, %v1042_v23 }
 0xd17   :  { %v1046_v25 = vmul.f32 %v1044_v24, %v1044_v24 }
 0xd19   :  { %v1048_v26 = vsel %vm39_vm0, %v1046_v25, 0.0 }
 0xd1a   :  { %v1041_v27 = vpop.xlane.xlu1 %1040  ;;  %1049 = vadd.xlane.f32.xlu2 %v1048_v26 }
 0xd1b   :  { %v1043_v1 = vmul.f32 %v1041_v27, %v1705_v10 }
 0xd1d   :  { %v1045_v28 = vsub.f32 %v1035_v20, %v1043_v1 }
 0xd1f   :  { %v1047_v29 = vmul.f32 %v1045_v28, %v1045_v28 }
 0xd21   :  { %v1051_v30 = vsel %vm39_vm0, %v1047_v29, 0.0 }
 0xd22   :  { %1052 = vadd.xlane.f32.xlu0 %v1051_v30 }
 0xd8d   :  { %v1050_v31 = vpop.xlane.xlu2 %1049 }
 0xd8e   :  { %v1054_v32 = vmul.f32 %v1050_v31, %v1705_v10 }
 0xd90   :  { %v1056_v34 = vadd.f32 1e-12, %v1054_v32 }
 0xd92   :  { %1588 = vrsqrt.f32 %v1056_v34  ;;  %vm1064_vm9 = vweird.f32 %v1056_v34 }
 0xd95   :  { %v1053_v36 = vpop.xlane.xlu0 %1052 }
 0xd96   :  { %v1055_v37 = vmul.f32 %v1053_v36, %v1705_v10 }
 0xd98   :  { %v1589_v38 = vpop.eup %1588  ;;  %v1057_v39 = vadd.f32 1e-12, %v1055_v37 }
 0xd99   :  { %v1059_v33 = vmul.f32 %v1589_v38, %v1056_v34  ;;  %vm1065_vm8 = vweird.f32 %v1589_v38 }
 0xd9a   :  { %1590 = vrsqrt.f32 %v1057_v39  ;;  %vm1066_vm10 = vmor %vm1064_vm9, %vm1065_vm8  ;;  %vm1074_vm11 = vweird.f32 %v1057_v39 }
 0xd9b   :  { %v1060_v40 = vmul.f32 %v1589_v38, %v1059_v33 }
 0xd9d   :  { %v1061_v41 = vmul.f32 0.5, %v1060_v40 }
 0xd9f   :  { %v1062_v43 = vsub.f32 1.5, %v1061_v41 }
 0xda0   :  { %v1591_v44 = vpop.eup %1590 }
 0xda1   :  { %v1063_v45 = vmul.f32 %v1589_v38, %v1062_v43  ;;  %v1069_v46 = vmul.f32 %v1591_v44, %v1057_v39  ;;  %vm1075_vm7 = vweird.f32 %v1591_v44 }
 0xda2   :  { %vm1076_vm12 = vmor %vm1074_vm11, %vm1075_vm7 }
 0xda3   :  { %v1070_v47 = vmul.f32 %v1591_v44, %v1069_v46  ;;  %v1067_v48 = vsel %vm1066_vm10, %v1589_v38, %v1063_v45 }
 0xda4   :  { %v1078_v56 = vmul.f32 %v1067_v48, %v1044_v24 }
 0xda5   :  { %v1071_v49 = vmul.f32 0.5, %v1070_v47 }
 0xda6   :  { %v1081_v61 = vmul.f32 %v1080_v54, %v1078_v56 }
 0xda7   :  { %v1072_v52 = vsub.f32 1.5, %v1071_v49 }
 0xda8   :  { %v1084_v57 = vadd.f32 %v1083_v60, %v1081_v61 }
 0xda9   :  { %v1073_v42 = vmul.f32 %v1591_v44, %v1072_v52  ;;  %v1516_v52 = vld [vmem:[%s2018_s8 + $0x8] sm:$0xff] }
 0xdaa   :  { %1280 = vmatpush.bf16.msra.mxu3 %v1516_v52 }
 0xdab   :  { %v1077_v58 = vsel %vm1076_vm12, %v1591_v44, %v1073_v42  ;;  %v1515_v42 = vld [vmem:[%s2018_s8] sm:$0xff] }
 0xdac   :  { %v1079_v62 = vmul.f32 %v1077_v58, %v1045_v28  ;;  %v1150_v28 = vperm.slane %v1866_v4, 5 }
 0xdae   :  { %v1082_v59 = vmul.f32 %v1080_v54, %v1079_v62  ;;  %1281 = vmatpush.bf16.msra.mxu3 %v1515_v42 }
 0xdb0   :  { %v1085_v63 = vadd.f32 %v1083_v60, %v1082_v59 }
 0xdb2   :  { %v1086_v0 = vpack.c.bf16 %v1085_v63, %v1084_v57 }
 0xdb4   :  { %1459 = vmatmul.msk.bf16.vlgmr.msrb.gmra.mxu1 %vm39_vm0, %v1086_v0 }
 0xe31   :  { %v1117_v6 = vpop.f32.mrf.mxu1 }
 0xe32   :  { %v1118_v8 = vadd.f32 %v1117_v6, %v1092_v55 }
 0xe34   :  { %v1122_v11 = vmul.f32 %v1118_v8, %v1118_v8 }
 0xe36   :  { %v1124_v12 = vmul.f32 %v1122_v11, %v1118_v8  ;;  %v1241_v11 = vperm.slane %v1866_v4, 7 }
 0xe38   :  { %v1126_v13 = vmul.f32 0.044715, %v1124_v12 }
 0xe39   :  { %v1119_v9 = vpop.f32.mrf.mxu1 }
 0xe3a   :  { %v1128_v14 = vadd.f32 %v1126_v13, %v1118_v8  ;;  %v1120_v15 = vadd.f32 %v1119_v9, %v1092_v55  ;;  %v1238_v55 = vperm.slane %v1866_v4, 6 }
 0xe3c   :  { %v1130_v50 = vmul.f32 0.7978846, %v1128_v14  ;;  %v1123_v16 = vmul.f32 %v1120_v15, %v1120_v15 }
 0xe3e   :  { %v1125_v17 = vmul.f32 %v1123_v16, %v1120_v15  ;;  %1592 = vtanh.f32 %v1130_v50 }
 0xe40   :  { %v1127_v18 = vmul.f32 0.044715, %v1125_v17 }
 0xe42   :  { %v1129_v51 = vadd.f32 %v1127_v18, %v1120_v15 }
 0xe44   :  { %v1131_v19 = vmul.f32 0.7978846, %v1129_v51  ;;  %v1593_v20 = vpop.eup %1592 }
 0xe45   :  { %v1134_v21 = vadd.f32 1.0, %v1593_v20 }
 0xe46   :  { %1594 = vtanh.f32 %v1131_v19 }
 0xe47   :  { %v1136_v23 = vmul.f32 0.5, %v1134_v21 }
 0xe49   :  { %v1138_v26 = vmul.f32 %v1136_v23, %v1118_v8  ;;  %v1606_v23 = vld [vmem:[%s2012_s2] sm:$0xf] }
 0xe4c   :  { %v1595_v22 = vpop.eup %1594 }
 0xe4d   :  { %v1135_v24 = vadd.f32 1.0, %v1595_v22 }
 0xe4f   :  { %v1137_v25 = vmul.f32 0.5, %v1135_v24  ;;  %v1250_v24 = vperm.slane %v1606_v23, 2 }
 0xe51   :  { %v1139_v27 = vmul.f32 %v1137_v25, %v1120_v15 }
 0xe53   :  { %v1140_v1 = vpack.c.bf16 %v1139_v27, %v1138_v26 }
 0xe55   :  { %1484 = vmatmul.msk.bf16.vlgmr.msrb.gmra.mxu2 %vm600_vm6, %v1140_v1 }
 0xed8   :  { %v1187_v29 = vpop.f32.mrf.mxu2 }
 0xed9   :  { %v1188_v30 = vadd.f32 %v1187_v29, %v1150_v28  ;;  %v1640_v29 = vmov 0  }
 0xeda   :  { %1536 = vset.pattern.permute.xlu1 %v1640_v29  ;;  %1537 = vset.pattern.permute.xlu0 %v1640_v29 }
 0xedb   :  { %v1192_v2 = vadd.f32 %v1188_v30, %v1084_v57  ;;  %v1289_v30 = vperm.slane %v1606_v23, 3 }
 0xedd   :  { %v1194_v31 = vsel %vm39_vm0, %v1192_v2, 0.0 }
 0xede   :  { %1195 = vadd.xlane.f32.xlu2 %v1194_v31 }
 0xee0   :  { %v1189_v32 = vpop.f32.mrf.mxu2 }
 0xee1   :  { %v1190_v34 = vadd.f32 %v1189_v32, %v1150_v28 }
 0xee3   :  { %v1193_v35 = vadd.f32 %v1190_v34, %v1085_v63 }
 0xee5   :  { %v1197_v36 = vsel %vm39_vm0, %v1193_v35, 0.0 }
 0xee6   :  { %1198 = vadd.xlane.f32.xlu1 %v1197_v36 }
 0xef6   :  { %1292 = vrot.lane.b32.xlu2 %v1516_v52, %s1635_s25 }
 0xf51   :  { %v1196_v37 = vpop.xlane.xlu2 %1195 }
 0xf52   :  { %v1200_v38 = vmul.f32 %v1196_v37, %v1705_v10 }
 0xf54   :  { %v1202_v39 = vsub.f32 %v1192_v2, %v1200_v38 }
 0xf56   :  { %v1204_v33 = vmul.f32 %v1202_v39, %v1202_v39 }
 0xf58   :  { %v1206_v40 = vsel %vm39_vm0, %v1204_v33, 0.0 }
 0xf59   :  { %v1199_v41 = vpop.xlane.xlu1 %1198  ;;  %1207 = vadd.xlane.f32.xlu1 %v1206_v40  ;;  %v1293_v22 = vpop.permute.xlu2 %1292  ;;  %v1327_v40 = vlaneseq }
 0xf5a   :  { %v1201_v43 = vmul.f32 %v1199_v41, %v1705_v10  ;;  %1305 = vmatpush.bf16.msra.mxu0 %v1293_v22 }
 0xf5b   :  { %v1328_v41 = vand.u32 127, %v1327_v40 }
 0xf5c   :  { %v1203_v44 = vsub.f32 %v1193_v35, %v1201_v43  ;;  %v1314_v35 = vld [vmem:[%s2010_s0] sm:$0x3] }
 0xf5e   :  { %v1205_v45 = vmul.f32 %v1203_v44, %v1203_v44 }
 0xf60   :  { %v1209_v46 = vsel %vm39_vm0, %v1205_v45, 0.0 }
 0xf61   :  { %1210 = vadd.xlane.f32.xlu0 %v1209_v46 }
 0xf75   :  { %1290 = vrot.lane.b32.xlu0 %v1515_v42, %s1635_s25 }
 0xfcc   :  { %v1208_v47 = vpop.xlane.xlu1 %1207 }
 0xfcd   :  { %v1212_v48 = vmul.f32 %v1208_v47, %v1705_v10 }
 0xfcf   :  { %v1214_v49 = vadd.f32 1e-12, %v1212_v48 }
 0xfd1   :  { %1596 = vrsqrt.f32 %v1214_v49  ;;  %vm1222_vm13 = vweird.f32 %v1214_v49 }
 0xfd4   :  { %v1211_v54 = vpop.xlane.xlu0 %1210 }
 0xfd5   :  { %v1213_v56 = vmul.f32 %v1211_v54, %v1705_v10 }
 0xfd7   :  { %v1597_v58 = vpop.eup %1596  ;;  %v1215_v60 = vadd.f32 1e-12, %v1213_v56 }
 0xfd8   :  { %v1217_v61 = vmul.f32 %v1597_v58, %v1214_v49  ;;  %vm1223_vm6 = vweird.f32 %v1597_v58 }
 0xfd9   :  { %1598 = vrsqrt.f32 %v1215_v60  ;;  %vm1224_vm14 = vmor %vm1222_vm13, %vm1223_vm6  ;;  %vm1232_vm1 = vweird.f32 %v1215_v60 }
 0xfda   :  { %v1218_v62 = vmul.f32 %v1597_v58, %v1217_v61 }
 0xfdc   :  { %v1219_v59 = vmul.f32 0.5, %v1218_v62 }
 0xfde   :  { %v1220_v57 = vsub.f32 1.5, %v1219_v59 }
 0xfdf   :  { %v1599_v63 = vpop.eup %1598 }
 0xfe0   :  { %v1221_v0 = vmul.f32 %v1597_v58, %v1220_v57  ;;  %v1227_v3 = vmul.f32 %v1599_v63, %v1215_v60  ;;  %vm1233_vm15 = vweird.f32 %v1599_v63 }
 0xfe1   :  { %vm1234_vm2 = vmor %vm1232_vm1, %vm1233_vm15 }
 0xfe2   :  { %v1225_v10 = vsel %vm1224_vm14, %v1597_v58, %v1221_v0  ;;  %v1228_v5 = vmul.f32 %v1599_v63, %v1227_v3 }
 0xfe3   :  { %v1236_v6 = vmul.f32 %v1225_v10, %v1202_v39 }
 0xfe4   :  { %v1229_v53 = vmul.f32 0.5, %v1228_v5 }
 0xfe5   :  { %v1239_v12 = vmul.f32 %v1238_v55, %v1236_v6 }
 0xfe6   :  { %v1230_v7 = vsub.f32 1.5, %v1229_v53 }
 0xfe7   :  { %v1242_v14 = vadd.f32 %v1241_v11, %v1239_v12  ;;  %v1291_v4 = vpop.permute.xlu0 %1290 }
 0xfe8   :  { %v1231_v8 = vmul.f32 %v1599_v63, %v1230_v7  ;;  %1306 = vmatpush.bf16.msra.mxu0 %v1291_v4 }
 0xfe9   :  { %v1248_v16 = vpack.c.bf16 %v1242_v14, %v1242_v14 }
 0xfea   :  { %v1235_v13 = vsel %vm1234_vm2, %v1599_v63, %v1231_v8 }
 0xfeb   :  { %v1237_v9 = vmul.f32 %v1235_v13, %v1203_v44  ;;  %v1253_v51 = vunpack.c.l.b16 %v1248_v16 }
 0xfed   :  { %v1240_v15 = vmul.f32 %v1238_v55, %v1237_v9 }
 0xfef   :  { %v1243_v50 = vadd.f32 %v1241_v11, %v1240_v15 }
 0xff1   :  { %v1249_v17 = vpack.c.bf16 %v1243_v50, %v1243_v50 }
 0xff3   :  { %v1254_v18 = vunpack.c.l.b16 %v1249_v17 }
 0xff5   :  { %v1255_v19 = vrot.slane %v1254_v18, 7 }
 0xff7   :  { %v1257_v20 = vsel %vm1256_vm3, %v1255_v19, %v1253_v51 }
 0xff8   :  { %v1258_v21 = vpack.c.b16 %v1257_v20, %v1257_v20 }
 0xffa   :  { %1493 = vmatmul.msk.bf16.vlgmr.msra.gmra.mxu3 %vm39_vm0, %v1258_v21 }
0x107d   :  { %v1283_v25 = vpop.f32.mrf.mxu3 }
0x107e   :  { %v1284_v26 = vadd.f32 %v1283_v25, %v1250_v24 }
0x1080   :  { %1600 = vtanh.f32 %v1284_v26 }
0x1085   :  { %v1285_v27 = vpop.f32.mrf.mxu3 }
0x1086   :  { %v1601_v1 = vpop.eup %1600 }
0x1087   :  { %v1288_v28 = vpack.c.bf16 %v1601_v1, %v1601_v1 }
0x1089   :  { %1494 = vmatmul.msk.bf16.vlgmr.msra.gmra.mxu0 %vm39_vm0, %v1288_v28 }
0x1106   :  { %v1308_v2 = vpop.f32.mrf.mxu0 }
0x1107   :  { %v1309_v31 = vadd.f32 %v1308_v2, %v1289_v30 }
0x1109   :  { %v1315_v32 = vsel %vm1312_vm4, %v1309_v31, -inf  ;;  %1313 = vst.msk [vmem:[#allocation2] sm:$0x3] %vm1312_vm4, %v1309_v31 }
0x110a   :  { %1316 = vmax.xlane.f32.xlu1 %v1315_v32  ;;  %1350 = dma.vmem_to_hbm [thread:$0]  %s1346_s14, 32, %s1348_s3, [#allocation3]  }
0x110e   :  { %v1310_v34 = vpop.f32.mrf.mxu0 }
0x1123   :  { %1330 = vperm.xlu1 %1536, %v1314_v35  }
0x117d   :  { %v1317_v36 = vpop.xlane.xlu1 %1316 }
0x117e   :  { %v1318_v37 = vsub.f32 %v1309_v31, %v1317_v36 }
0x1180   :  { %v1319_v38 = vmul.f32 1.442695, %v1318_v37 }
0x1182   :  { %1602 = vpow2.f32 %v1319_v38 }
0x1188   :  { %v1603_v39 = vpop.eup %1602 }
0x1189   :  { %v1321_v33 = vsel %vm1312_vm4, %v1603_v39, 0.0 }
0x118a   :  { %1322 = vadd.xlane.f32.xlu0 %v1321_v33 }
0x1195   :  { %v1331_v43 = vpop.permute.xlu1 %1330 }
0x1196   :  { %vm1332_vm0 = vcmp.eq.s32.totalorder %v1328_v41, %v1331_v43 }
0x1197   :  { %v1333_v44 = vsel %vm1332_vm0, %v1309_v31, 0.0 }
0x1198   :  { %v1334_v45 = vsel %vm1312_vm4, %v1333_v44, 0.0 }
0x1199   :  { %1335 = vadd.xlane.f32.xlu2 %v1334_v45 }
0x11fd   :  { %v1323_v46 = vpop.xlane.xlu0 %1322 }
0x11fe   :  { %1604 = vlog2.f32 %v1323_v46 }
0x1204   :  { %v1605_v47 = vpop.eup %1604 }
0x1205   :  { %v1325_v48 = vmul.f32 0.6931472, %v1605_v47 }
0x1207   :  { %v1326_v49 = vadd.f32 %v1325_v48, %v1317_v36 }
0x120c   :  { %v1336_v52 = vpop.xlane.xlu2 %1335 }
0x120d   :  { %v1337_v54 = vsub.f32 %v1326_v49, %v1336_v52 }
0x120f   :  { %1339 = vst.msk [vmem:[%s2020_s10] sm:$0x3] %vm1338_vm5, %v1337_v54 }
0x1210   :  { %1631 = dma.done.wait [#allocation3], 32  }
0x1211   :  { %1632 = vsyncadd [#allocation3], 4294967264 }
0x1212   :  { %1359 = vsyncpa [#allocation3], 1 }

</bundles_post_ra>
